<compile_context>
chip_gen: v5e
topology: v5e:2x2
jax: 0.10.0
libtpu: 0.0.40
codegen_flags: <defaults>
</compile_context>

<pallas_src>
import functools

import jax
import jax.numpy as jnp
from jax.experimental import pallas as pl
from jax.experimental.pallas import tpu as pltpu


def _round_up(n: int, m: int) -> int:
    return ((n + m - 1) // m) * m


def _make_vestimator1_kernel(layer_num: int):
    """Kernel: layer_num x (Linear+ReLU), then Linear(3*D,1)+Sigmoid, per row tile."""
    n_mid = layer_num - 1  # layers after the (split) first layer

    def kernel(*refs):
        # refs layout:
        #   [0] x_ref   (TB, Fx)   flattened train features (f32)
        #   [1] y_ref   (TB, Fy)   train labels (f32)
        #   [2] d1_ref  (TB, D)    y_hat_diff (f32)
        #   [3] d2_ref  (TB, D)    weak_y_hat_diff (f32)
        #   [4] W0x (Fx,H) bf16, [5] W0y (Fy,H) bf16, [6] b0 (1,H) f32
        #   then (layer_num-1) x [W (in,out) bf16, b (1,out) f32]
        #   then Wc_h (D,1) bf16, Wc_d1 (D,1) bf16, Wc_d2 (D,1) bf16, bc (1,1) f32
        #   [-1] out_ref (TB, 1) f32
        x_ref, y_ref, d1_ref, d2_ref = refs[0], refs[1], refs[2], refs[3]
        out_ref = refs[-1]
        p = refs[4:-1]

        bf16, f32 = jnp.bfloat16, jnp.float32

        # First layer: exact split matmul for concat([x, y], dim=1) @ W0 + b0.
        w0x, w0y, b0 = p[0][...], p[1][...], p[2][...]
        h = (jnp.dot(x_ref[...].astype(bf16), w0x, preferred_element_type=f32)
             + jnp.dot(y_ref[...].astype(bf16), w0y, preferred_element_type=f32)
             + b0)
        h = jnp.maximum(h, 0.0)  # ReLU (f32 on the VPU)

        idx = 3
        for _ in range(n_mid):
            w, b = p[idx][...], p[idx + 1][...]
            idx += 2
            h = jnp.dot(h.astype(bf16), w, preferred_element_type=f32) + b
            h = jnp.maximum(h, 0.0)

        # Combine layer: exact split matmul for concat([net, d1, d2], dim=1) @ Wc + bc.
        wc_h, wc_d1, wc_d2, bc = (p[idx][...], p[idx + 1][...],
                                  p[idx + 2][...], p[idx + 3][...])
        z = (jnp.dot(h.astype(bf16), wc_h, preferred_element_type=f32)
             + jnp.dot(d1_ref[...].astype(bf16), wc_d1, preferred_element_type=f32)
             + jnp.dot(d2_ref[...].astype(bf16), wc_d2, preferred_element_type=f32)
             + bc)
        # Sigmoid: exp (EUP) + approximate reciprocal (EUP) -> essentially free.
        out_ref[...] = pl.reciprocal(1.0 + jnp.exp(-z), approx=True)

    return kernel


def init_vestimator1_params(key, input_dim, layer_num, hidden_num, output_dim):
    """Init mirroring torch.nn.Linear default U[-1/sqrt(fan_in), 1/sqrt(fan_in)].

    Weights are stored as (in, out) so the kernel computes x @ W + b.
    Combine layer is Linear(3 * output_dim, 1) (Vestimator_1).
    """
    dims = [input_dim] + [hidden_num] * (layer_num - 1) + [output_dim]
    params = []
    for i in range(layer_num):
        key, kw, kb = jax.random.split(key, 3)
        fan_in, fan_out = dims[i], dims[i + 1]
        bound = 1.0 / (fan_in ** 0.5)
        w = jax.random.uniform(kw, (fan_in, fan_out), jnp.float32, -bound, bound)
        b = jax.random.uniform(kb, (1, fan_out), jnp.float32, -bound, bound)
        params.append((w, b))
    key, kw, kb = jax.random.split(key, 3)
    fan_in = 3 * output_dim
    bound = 1.0 / (fan_in ** 0.5)
    wc = jax.random.uniform(kw, (fan_in, 1), jnp.float32, -bound, bound)
    bc = jax.random.uniform(kb, (1, 1), jnp.float32, -bound, bound)
    return params, (wc, bc)


@functools.partial(jax.jit, static_argnames=("layer_num", "batch_tile"))
def vestimator1_forward(x, y, y_hat_diff, weak_y_hat_diff, mlp_params,
                        combine_params, *, layer_num, batch_tile=256):
    B = x.shape[0]
    # TODO(synk): the literal torch.flatten(x, start_dim=2) keeps a 3-D tensor,
    # which is shape-inconsistent with the module's own cat(dim=1) followed by
    # Linear(output_dim*3, 1); we flatten all trailing feature dims (base-class
    # x.view(B, -1) behavior) so the concat -> MLP -> combine pipeline type-checks.
    x_flat = jnp.reshape(x, (B, -1)).astype(jnp.float32)
    y = y.astype(jnp.float32)
    d1 = y_hat_diff.astype(jnp.float32)
    d2 = weak_y_hat_diff.astype(jnp.float32)

    Fx = x_flat.shape[1]
    Fy = y.shape[1]
    D = d1.shape[1]

    bf16 = jnp.bfloat16
    (w0, b0) = mlp_params[0]
    rest = mlp_params[1:]
    wc, bc = combine_params
    assert wc.shape[0] == 3 * D, (wc.shape, D)

    # Split the first-layer / combine-layer weights once (exact concat fusion),
    # and pre-cast matmul weights to bf16 (tiny, VMEM-resident afterwards).
    w0x = w0[:Fx].astype(bf16)
    w0y = w0[Fx:].astype(bf16)
    wc_h = wc[:D].astype(bf16)
    wc_d1 = wc[D:2 * D].astype(bf16)
    wc_d2 = wc[2 * D:].astype(bf16)

    # Row (batch) tiling: TB rows per grid step.
    TB = min(batch_tile, _round_up(B, 8))
    B_pad = _round_up(B, TB)
    if B_pad != B:
        pad = ((0, B_pad - B), (0, 0))
        x_flat = jnp.pad(x_flat, pad)
        y = jnp.pad(y, pad)
        d1 = jnp.pad(d1, pad)
        d2 = jnp.pad(d2, pad)
    num_tiles = B_pad // TB

    operands = [x_flat, y, d1, d2, w0x, w0y, b0.astype(jnp.float32)]
    for (w, b) in rest:
        operands.append(w.astype(bf16))
        operands.append(b.astype(jnp.float32))
    operands += [wc_h, wc_d1, wc_d2, bc.astype(jnp.float32)]

    def row_spec(feat):
        # Tiled along rows; feature axis is the full array dim (lane axis).
        return pl.BlockSpec((TB, feat), lambda i: (i, 0))

    def resident_spec(shape):
        # Same block index every grid step -> weight stays resident in VMEM.
        return pl.BlockSpec(shape, lambda i: (0, 0))

    in_specs = [row_spec(Fx), row_spec(Fy), row_spec(D), row_spec(D)]
    in_specs += [resident_spec(op.shape) for op in operands[4:]]

    out = pl.pallas_call(
        _make_vestimator1_kernel(layer_num),
        out_shape=jax.ShapeDtypeStruct((B_pad, 1), jnp.float32),
        grid=(num_tiles,),
        in_specs=in_specs,
        out_specs=pl.BlockSpec((TB, 1), lambda i: (i, 0)),
        compiler_params=pltpu.CompilerParams(
            dimension_semantics=("parallel",)),
    )(*operands)

    return out[:B]


def vestimator1_reference(x, y, y_hat_diff, weak_y_hat_diff, mlp_params,
                          combine_params):
    """Pure-JAX f32 reference mirroring the torch forward."""
    B = x.shape[0]
    h = jnp.concatenate([jnp.reshape(x, (B, -1)), y], axis=1).astype(jnp.float32)
    for (w, b) in mlp_params:
        h = jnp.maximum(h @ w + b, 0.0)
    h = jnp.concatenate([h, y_hat_diff.astype(jnp.float32),
                         weak_y_hat_diff.astype(jnp.float32)], axis=1)
    wc, bc = combine_params
    return jax.nn.sigmoid(h @ wc + bc)


if __name__ == "__main__":
    # Small but grid-exercising shapes:
    #   x: (B, C, H, W) train features -> flattened to (B, C*H*W)
    #   y: (B, y_dim) train labels
    #   input_dim = C*H*W + y_dim, layer_num = 3, hidden_num = 32, output_dim = 8
    #   y_hat_diff / weak_y_hat_diff: (B, output_dim)
    # B = 512 with a 256-row tile -> 2 grid steps ("parallel" axis).
    B = 512
    C, H, W = 4, 8, 8
    y_dim = 16
    input_dim = C * H * W + y_dim      # 272
    layer_num = 3
    hidden_num = 32
    output_dim = 8

    key = jax.random.PRNGKey(0)
    kx, ky, k1, k2, kp = jax.random.split(key, 5)
    x = jax.random.normal(kx, (B, C, H, W), jnp.float32)
    y = jax.random.normal(ky, (B, y_dim), jnp.float32)
    y_hat_diff = jnp.abs(jax.random.normal(k1, (B, output_dim), jnp.float32))
    weak_y_hat_diff = jnp.abs(jax.random.normal(k2, (B, output_dim), jnp.float32))

    mlp_params, combine_params = init_vestimator1_params(
        kp, input_dim, layer_num, hidden_num, output_dim)

    out = vestimator1_forward(x, y, y_hat_diff, weak_y_hat_diff,
                              mlp_params, combine_params, layer_num=layer_num)
    out = jax.block_until_ready(out)

    ref = vestimator1_reference(x, y, y_hat_diff, weak_y_hat_diff,
                                mlp_params, combine_params)
    assert out.shape == (B, 1), out.shape
    max_err = float(jnp.max(jnp.abs(out - ref)))
    # bf16 MXU operands (f32 accumulation) + approx reciprocal vs pure-f32 reference.
    assert max_err < 3e-2, max_err

    print("KERNEL_OK")
</pallas_src>

<mosaic_0001>
module attributes {stable_mosaic.version = 11 : i64} {
  func.func @kernel(%arg0: i32, %arg1: memref<256x256xf32, #tpu.memory_space<vmem>>, %arg2: memref<256x16xf32, #tpu.memory_space<vmem>>, %arg3: memref<256x8xf32, #tpu.memory_space<vmem>>, %arg4: memref<256x8xf32, #tpu.memory_space<vmem>>, %arg5: memref<256x32xbf16, #tpu.memory_space<vmem>>, %arg6: memref<16x32xbf16, #tpu.memory_space<vmem>>, %arg7: memref<1x32xf32, #tpu.memory_space<vmem>>, %arg8: memref<32x32xbf16, #tpu.memory_space<vmem>>, %arg9: memref<1x32xf32, #tpu.memory_space<vmem>>, %arg10: memref<32x8xbf16, #tpu.memory_space<vmem>>, %arg11: memref<1x8xf32, #tpu.memory_space<vmem>>, %arg12: memref<8x1xbf16, #tpu.memory_space<vmem>>, %arg13: memref<8x1xbf16, #tpu.memory_space<vmem>>, %arg14: memref<8x1xbf16, #tpu.memory_space<vmem>>, %arg15: memref<1x1xf32, #tpu.memory_space<vmem>>, %arg16: memref<256x1xf32, #tpu.memory_space<vmem>>) attributes {dimension_semantics = [#tpu.dimension_semantics<parallel>], iteration_bounds = array<i64: 2>, scalar_prefetch = 0 : i64, scratch_operands = 0 : i64, tpu.core_type = #tpu.core_type<tc>, window_params = [{transform_indices = @transform_0, window_bounds = array<i64: 256, 256>}, {transform_indices = @transform_1, window_bounds = array<i64: 256, 16>}, {transform_indices = @transform_2, window_bounds = array<i64: 256, 8>}, {transform_indices = @transform_3, window_bounds = array<i64: 256, 8>}, {pipeline_mode = #tpu.pipeline_mode<synchronous>, transform_indices = @transform_4, window_bounds = array<i64: 256, 32>}, {pipeline_mode = #tpu.pipeline_mode<synchronous>, transform_indices = @transform_5, window_bounds = array<i64: 16, 32>}, {pipeline_mode = #tpu.pipeline_mode<synchronous>, transform_indices = @transform_6, window_bounds = array<i64: 1, 32>}, {pipeline_mode = #tpu.pipeline_mode<synchronous>, transform_indices = @transform_7, window_bounds = array<i64: 32, 32>}, {pipeline_mode = #tpu.pipeline_mode<synchronous>, transform_indices = @transform_8, window_bounds = array<i64: 1, 32>}, {pipeline_mode = #tpu.pipeline_mode<synchronous>, transform_indices = @transform_9, window_bounds = array<i64: 32, 8>}, {pipeline_mode = #tpu.pipeline_mode<synchronous>, transform_indices = @transform_10, window_bounds = array<i64: 1, 8>}, {pipeline_mode = #tpu.pipeline_mode<synchronous>, transform_indices = @transform_11, window_bounds = array<i64: 8, 1>}, {pipeline_mode = #tpu.pipeline_mode<synchronous>, transform_indices = @transform_12, window_bounds = array<i64: 8, 1>}, {pipeline_mode = #tpu.pipeline_mode<synchronous>, transform_indices = @transform_13, window_bounds = array<i64: 8, 1>}, {pipeline_mode = #tpu.pipeline_mode<synchronous>, transform_indices = @transform_14, window_bounds = array<i64: 1, 1>}, {transform_indices = @transform_15, window_bounds = array<i64: 256, 1>}]} {
    %c0 = arith.constant 0 : index
    %c0_0 = arith.constant 0 : index
    %0 = vector.load %arg5[%c0, %c0_0] : memref<256x32xbf16, #tpu.memory_space<vmem>>, vector<256x32xbf16>
    %c0_1 = arith.constant 0 : index
    %c0_2 = arith.constant 0 : index
    %1 = vector.load %arg6[%c0_1, %c0_2] : memref<16x32xbf16, #tpu.memory_space<vmem>>, vector<16x32xbf16>
    %c0_3 = arith.constant 0 : index
    %c0_4 = arith.constant 0 : index
    %2 = vector.load %arg7[%c0_3, %c0_4] : memref<1x32xf32, #tpu.memory_space<vmem>>, vector<1x32xf32>
    %c0_5 = arith.constant 0 : index
    %c0_6 = arith.constant 0 : index
    %3 = vector.load %arg1[%c0_5, %c0_6] : memref<256x256xf32, #tpu.memory_space<vmem>>, vector<256x256xf32>
    %4 = arith.truncf %3 : vector<256x256xf32> to vector<256x256xbf16>
    %cst = arith.constant dense<0.000000e+00> : vector<256x32xf32>
    %5 = tpu.matmul %4, %0, %cst {dimension_numbers = #tpu.dot_dimension_numbers<[1], [0], [0], [1], [0, 0, 1, 1], [], []>} : vector<256x256xbf16>, vector<256x32xbf16>, vector<256x32xf32> -> vector<256x32xf32>
    %c0_7 = arith.constant 0 : index
    %c0_8 = arith.constant 0 : index
    %6 = vector.load %arg2[%c0_7, %c0_8] : memref<256x16xf32, #tpu.memory_space<vmem>>, vector<256x16xf32>
    %7 = arith.truncf %6 : vector<256x16xf32> to vector<256x16xbf16>
    %cst_9 = arith.constant dense<0.000000e+00> : vector<256x32xf32>
    %8 = tpu.matmul %7, %1, %cst_9 {dimension_numbers = #tpu.dot_dimension_numbers<[1], [0], [0], [1], [0, 0, 1, 1], [], []>} : vector<256x16xbf16>, vector<16x32xbf16>, vector<256x32xf32> -> vector<256x32xf32>
    %9 = arith.addf %5, %8 : vector<256x32xf32>
    %10 = vector.broadcast %2 : vector<1x32xf32> to vector<256x32xf32>
    %11 = arith.addf %9, %10 : vector<256x32xf32>
    %cst_10 = arith.constant 0.000000e+00 : f32
    %12 = vector.broadcast %cst_10 : f32 to vector<256x32xf32>
    %13 = arith.maximumf %11, %12 : vector<256x32xf32>
    %c0_11 = arith.constant 0 : index
    %c0_12 = arith.constant 0 : index
    %14 = vector.load %arg8[%c0_11, %c0_12] : memref<32x32xbf16, #tpu.memory_space<vmem>>, vector<32x32xbf16>
    %c0_13 = arith.constant 0 : index
    %c0_14 = arith.constant 0 : index
    %15 = vector.load %arg9[%c0_13, %c0_14] : memref<1x32xf32, #tpu.memory_space<vmem>>, vector<1x32xf32>
    %16 = arith.truncf %13 : vector<256x32xf32> to vector<256x32xbf16>
    %cst_15 = arith.constant dense<0.000000e+00> : vector<256x32xf32>
    %17 = tpu.matmul %16, %14, %cst_15 {dimension_numbers = #tpu.dot_dimension_numbers<[1], [0], [0], [1], [0, 0, 1, 1], [], []>} : vector<256x32xbf16>, vector<32x32xbf16>, vector<256x32xf32> -> vector<256x32xf32>
    %18 = vector.broadcast %15 : vector<1x32xf32> to vector<256x32xf32>
    %19 = arith.addf %17, %18 : vector<256x32xf32>
    %cst_16 = arith.constant 0.000000e+00 : f32
    %20 = vector.broadcast %cst_16 : f32 to vector<256x32xf32>
    %21 = arith.maximumf %19, %20 : vector<256x32xf32>
    %c0_17 = arith.constant 0 : index
    %c0_18 = arith.constant 0 : index
    %22 = vector.load %arg10[%c0_17, %c0_18] : memref<32x8xbf16, #tpu.memory_space<vmem>>, vector<32x8xbf16>
    %c0_19 = arith.constant 0 : index
    %c0_20 = arith.constant 0 : index
    %23 = vector.load %arg11[%c0_19, %c0_20] : memref<1x8xf32, #tpu.memory_space<vmem>>, vector<1x8xf32>
    %24 = arith.truncf %21 : vector<256x32xf32> to vector<256x32xbf16>
    %cst_21 = arith.constant dense<0.000000e+00> : vector<256x8xf32>
    %25 = tpu.matmul %24, %22, %cst_21 {dimension_numbers = #tpu.dot_dimension_numbers<[1], [0], [0], [1], [0, 0, 1, 1], [], []>} : vector<256x32xbf16>, vector<32x8xbf16>, vector<256x8xf32> -> vector<256x8xf32>
    %26 = vector.broadcast %23 : vector<1x8xf32> to vector<256x8xf32>
    %27 = arith.addf %25, %26 : vector<256x8xf32>
    %cst_22 = arith.constant 0.000000e+00 : f32
    %28 = vector.broadcast %cst_22 : f32 to vector<256x8xf32>
    %29 = arith.maximumf %27, %28 : vector<256x8xf32>
    %c0_23 = arith.constant 0 : index
    %c0_24 = arith.constant 0 : index
    %30 = vector.load %arg12[%c0_23, %c0_24] : memref<8x1xbf16, #tpu.memory_space<vmem>>, vector<8x1xbf16>
    %c0_25 = arith.constant 0 : index
    %c0_26 = arith.constant 0 : index
    %31 = vector.load %arg13[%c0_25, %c0_26] : memref<8x1xbf16, #tpu.memory_space<vmem>>, vector<8x1xbf16>
    %c0_27 = arith.constant 0 : index
    %c0_28 = arith.constant 0 : index
    %32 = vector.load %arg14[%c0_27, %c0_28] : memref<8x1xbf16, #tpu.memory_space<vmem>>, vector<8x1xbf16>
    %c0_29 = arith.constant 0 : index
    %c0_30 = arith.constant 0 : index
    %33 = vector.load %arg15[%c0_29, %c0_30] : memref<1x1xf32, #tpu.memory_space<vmem>>, vector<1x1xf32>
    %34 = arith.truncf %29 : vector<256x8xf32> to vector<256x8xbf16>
    %cst_31 = arith.constant dense<0.000000e+00> : vector<256x1xf32>
    %35 = tpu.matmul %34, %30, %cst_31 {dimension_numbers = #tpu.dot_dimension_numbers<[1], [0], [0], [1], [0, 0, 1, 1], [], []>} : vector<256x8xbf16>, vector<8x1xbf16>, vector<256x1xf32> -> vector<256x1xf32>
    %c0_32 = arith.constant 0 : index
    %c0_33 = arith.constant 0 : index
    %36 = vector.load %arg3[%c0_32, %c0_33] : memref<256x8xf32, #tpu.memory_space<vmem>>, vector<256x8xf32>
    %37 = arith.truncf %36 : vector<256x8xf32> to vector<256x8xbf16>
    %cst_34 = arith.constant dense<0.000000e+00> : vector<256x1xf32>
    %38 = tpu.matmul %37, %31, %cst_34 {dimension_numbers = #tpu.dot_dimension_numbers<[1], [0], [0], [1], [0, 0, 1, 1], [], []>} : vector<256x8xbf16>, vector<8x1xbf16>, vector<256x1xf32> -> vector<256x1xf32>
    %39 = arith.addf %35, %38 : vector<256x1xf32>
    %c0_35 = arith.constant 0 : index
    %c0_36 = arith.constant 0 : index
    %40 = vector.load %arg4[%c0_35, %c0_36] : memref<256x8xf32, #tpu.memory_space<vmem>>, vector<256x8xf32>
    %41 = arith.truncf %40 : vector<256x8xf32> to vector<256x8xbf16>
    %cst_37 = arith.constant dense<0.000000e+00> : vector<256x1xf32>
    %42 = tpu.matmul %41, %32, %cst_37 {dimension_numbers = #tpu.dot_dimension_numbers<[1], [0], [0], [1], [0, 0, 1, 1], [], []>} : vector<256x8xbf16>, vector<8x1xbf16>, vector<256x1xf32> -> vector<256x1xf32>
    %43 = arith.addf %39, %42 : vector<256x1xf32>
    %44 = vector.broadcast %33 : vector<1x1xf32> to vector<256x1xf32>
    %45 = arith.addf %43, %44 : vector<256x1xf32>
    %cst_38 = arith.constant 0.000000e+00 : f32
    %46 = vector.broadcast %cst_38 : f32 to vector<256x1xf32>
    %47 = arith.subf %46, %45 : vector<256x1xf32>
    %48 = math.exp %47 : vector<256x1xf32>
    %cst_39 = arith.constant 1.000000e+00 : f32
    %49 = vector.broadcast %cst_39 : f32 to vector<256x1xf32>
    %50 = arith.addf %49, %48 : vector<256x1xf32>
    %51 = tpu.reciprocal %50 {approx = true} : vector<256x1xf32> -> vector<256x1xf32>
    %c0_40 = arith.constant 0 : index
    %c0_41 = arith.constant 0 : index
    %52 = vector.load %arg16[%c0_40, %c0_41] : memref<256x1xf32, #tpu.memory_space<vmem>>, vector<256x1xf32>
    tpu.vector_store %arg16[%c0_40, %c0_41], %51 {strides = array<i32>} : memref<256x1xf32, #tpu.memory_space<vmem>>, vector<256x1xf32>,
    return
  }
  func.func @transform_0(%arg0: i32) -> (i32, i32) {
    %c0_i32 = arith.constant 0 : i32
    %c0_i32_0 = arith.constant 0 : i32
    return %arg0, %c0_i32 : i32, i32
  }
  func.func @transform_1(%arg0: i32) -> (i32, i32) {
    %c0_i32 = arith.constant 0 : i32
    %c0_i32_0 = arith.constant 0 : i32
    return %arg0, %c0_i32 : i32, i32
  }
  func.func @transform_2(%arg0: i32) -> (i32, i32) {
    %c0_i32 = arith.constant 0 : i32
    %c0_i32_0 = arith.constant 0 : i32
    return %arg0, %c0_i32 : i32, i32
  }
  func.func @transform_3(%arg0: i32) -> (i32, i32) {
    %c0_i32 = arith.constant 0 : i32
    %c0_i32_0 = arith.constant 0 : i32
    return %arg0, %c0_i32 : i32, i32
  }
  func.func @transform_4(%arg0: i32) -> (i32, i32) {
    %c0_i32 = arith.constant 0 : i32
    %c0_i32_0 = arith.constant 0 : i32
    %c0_i32_1 = arith.constant 0 : i32
    return %c0_i32, %c0_i32_0 : i32, i32
  }
  func.func @transform_5(%arg0: i32) -> (i32, i32) {
    %c0_i32 = arith.constant 0 : i32
    %c0_i32_0 = arith.constant 0 : i32
    %c0_i32_1 = arith.constant 0 : i32
    return %c0_i32, %c0_i32_0 : i32, i32
  }
  func.func @transform_6(%arg0: i32) -> (i32, i32) {
    %c0_i32 = arith.constant 0 : i32
    %c0_i32_0 = arith.constant 0 : i32
    %c0_i32_1 = arith.constant 0 : i32
    return %c0_i32, %c0_i32_0 : i32, i32
  }
  func.func @transform_7(%arg0: i32) -> (i32, i32) {
    %c0_i32 = arith.constant 0 : i32
    %c0_i32_0 = arith.constant 0 : i32
    %c0_i32_1 = arith.constant 0 : i32
    return %c0_i32, %c0_i32_0 : i32, i32
  }
  func.func @transform_8(%arg0: i32) -> (i32, i32) {
    %c0_i32 = arith.constant 0 : i32
    %c0_i32_0 = arith.constant 0 : i32
    %c0_i32_1 = arith.constant 0 : i32
    return %c0_i32, %c0_i32_0 : i32, i32
  }
  func.func @transform_9(%arg0: i32) -> (i32, i32) {
    %c0_i32 = arith.constant 0 : i32
    %c0_i32_0 = arith.constant 0 : i32
    %c0_i32_1 = arith.constant 0 : i32
    return %c0_i32, %c0_i32_0 : i32, i32
  }
  func.func @transform_10(%arg0: i32) -> (i32, i32) {
    %c0_i32 = arith.constant 0 : i32
    %c0_i32_0 = arith.constant 0 : i32
    %c0_i32_1 = arith.constant 0 : i32
    return %c0_i32, %c0_i32_0 : i32, i32
  }
  func.func @transform_11(%arg0: i32) -> (i32, i32) {
    %c0_i32 = arith.constant 0 : i32
    %c0_i32_0 = arith.constant 0 : i32
    %c0_i32_1 = arith.constant 0 : i32
    return %c0_i32, %c0_i32_0 : i32, i32
  }
  func.func @transform_12(%arg0: i32) -> (i32, i32) {
    %c0_i32 = arith.constant 0 : i32
    %c0_i32_0 = arith.constant 0 : i32
    %c0_i32_1 = arith.constant 0 : i32
    return %c0_i32, %c0_i32_0 : i32, i32
  }
  func.func @transform_13(%arg0: i32) -> (i32, i32) {
    %c0_i32 = arith.constant 0 : i32
    %c0_i32_0 = arith.constant 0 : i32
    %c0_i32_1 = arith.constant 0 : i32
    return %c0_i32, %c0_i32_0 : i32, i32
  }
  func.func @transform_14(%arg0: i32) -> (i32, i32) {
    %c0_i32 = arith.constant 0 : i32
    %c0_i32_0 = arith.constant 0 : i32
    %c0_i32_1 = arith.constant 0 : i32
    return %c0_i32, %c0_i32_0 : i32, i32
  }
  func.func @transform_15(%arg0: i32) -> (i32, i32) {
    %c0_i32 = arith.constant 0 : i32
    %c0_i32_0 = arith.constant 0 : i32
    return %arg0, %c0_i32 : i32, i32
  }
}

</mosaic_0001>

<bundles_post_ra>
// kernel: vestimator1_forward.1
= control target key start
LH: loop header
LB: loop body
LE: loop exit
PB: predicated region body
PF: predicated region fallthrough
CT: control target
= control target key end

     0   :  { %s2987_s20 = smov 0   ;;  %s3644_s0 = inlined_call_operand.vmem [shape: f32[512,256], index: 0, kind: input, shape index: {}]   ;;  %s3645_s1 = inlined_call_operand.vmem [shape: f32[512,16], index: 1, kind: input, shape index: {}]   ;;  %s3646_s2 = inlined_call_operand.vmem [shape: f32[512,8], index: 2, kind: input, shape index: {}]   ;;  %s3647_s3 = inlined_call_operand.vmem [shape: f32[512,8], index: 3, kind: input, shape index: {}]   ;;  %s3648_s4 = inlined_call_operand.vmem [shape: bf16[256,32], index: 4, kind: input, shape index: {}]   ;;  %s3649_s5 = inlined_call_operand.vmem [shape: bf16[16,32], index: 5, kind: input, shape index: {}]   ;;  %s3650_s6 = inlined_call_operand.vmem [shape: f32[1,32], index: 6, kind: input, shape index: {}]   ;;  %s3651_s7 = inlined_call_operand.vmem [shape: bf16[32,32], index: 7, kind: input, shape index: {}]   ;;  %s3652_s8 = inlined_call_operand.vmem [shape: f32[1,32], index: 8, kind: input, shape index: {}]   ;;  %s3653_s9 = inlined_call_operand.vmem [shape: bf16[32,8], index: 9, kind: input, shape index: {}]   ;;  %s3654_s10 = inlined_call_operand.vmem [shape: f32[1,8], index: 10, kind: input, shape index: {}]   ;;  %s3655_s11 = inlined_call_operand.vmem [shape: bf16[8,1], index: 11, kind: input, shape index: {}]   ;;  %s3656_s12 = inlined_call_operand.vmem [shape: bf16[8,1], index: 12, kind: input, shape index: {}]   ;;  %s3657_s13 = inlined_call_operand.vmem [shape: bf16[8,1], index: 13, kind: input, shape index: {}]   ;;  %s3658_s14 = inlined_call_operand.<no memory space> [shape: f32[1,1], index: 14, kind: input, shape index: {}]   ;;  %s3659_s15 = inlined_call_operand.vmem [shape: f32[512,1], index: 15, kind: output, shape index: {}]  }
   0x1   :  { %v20_v0 = vstv %s3658_s14 }
   0x2   :  { %21 = vst [vmem:[#allocation2] sm:$0x1] %v20_v0 }
   0x3 LB: > { %s2535_s21 = sadd.s32 4294967295, %s2902_s20   ;;  %p2539_p0 = scmp.ge.s32.totalorder %s2902_s20, 1  ;;  %s2902_s20 = sphi %s2987_s20, %s27_s20  }
   0x4   : > { %p474_p1 = scmp.lt.s32.totalorder %s2902_s20, 3 }
   0x6   : > { %p475_p2 = pnand %p2539_p0, %p474_p1 }
   0x7   : > { %s2540_s25 = sshll.u32 (!%p475_p2), %s2535_s21, 5 }
   0x8   : > { %478 = sbr.rel (%p475_p2) target bundleno = 881 (0x371), region = 80  ;;  %p539_p3 = scmp.lt.s32.totalorder (!%p475_p2), %s2540_s25, 63 }
   0xd   : > { %v2741_v1 = vld [vmem:[%s3648_s4 + $0x38] sm:$0xff]  ;;  %v2740_v3 = vld [vmem:[%s3648_s4 + $0x30] sm:$0xff]  ;;  %s3661_s25 = smov (!%p539_p3, %s2540_s25), 63  ;;  %v2750_v5 = vld [vmem:[%s3649_s5] sm:$0xff]  ;;  %vm755_vm0 = vcmask 130048   ;;  %vm1762_vm1 = vcmask 1043456  }
   0xe   : > { %v2749_v2 = vld [vmem:[%s3648_s4 + $0x78] sm:$0xff]  ;;  %989 = vmatpush.bf16.msra.mxu1 %v2741_v1  ;;  %v2748_v4 = vld [vmem:[%s3648_s4 + $0x70] sm:$0xff]  ;;  %v2739_v6 = vld [vmem:[%s3648_s4 + $0x28] sm:$0xff]  ;;  %s3019_s22 = sshll.u32 %s3661_s25, 3  ;;  %811 = vmatpush.bf16.msra.mxu0 %v2750_v5  ;;  %s2733_s26 = sshll.u32 %s3661_s25, 4  ;;  %vm1270_vm2 = vcmask 261120  }
   0xf   : > { %1078 = vmatpush.bf16.msra.mxu2 %v2749_v2  ;;  %v2747_v7 = vld [vmem:[%s3648_s4 + $0x68] sm:$0xff]  ;;  %s3025_s24 = scalar_lea.vmem %s3645_s1, %s3019_s22  ;;  %v2738_v11 = vld [vmem:[%s3648_s4 + $0x20] sm:$0xff]  ;;  %v2737_v13 = vld [vmem:[%s3648_s4 + $0x18] sm:$0xff]  ;;  %s3060_s18 = scalar_lea.vmem %s3644_s0, %s2733_s26  ;;  %vm1713_vm3 = vcmask 64512   ;;  %vm2410_vm4 = vcmask 7168  }
  0x10   : > { %v701_v8 = vld [vmem:[%s3025_s24] sm:$0xff]  ;;  %v702_v9 = vld [vmem:[%s3025_s24 + $0x8] sm:$0xff]  ;;  %v2745_v14 = vld [vmem:[%s3648_s4 + $0x58] sm:$0xff]  ;;  %s3280_s16 = scalar_lea.vmem %s3647_s3, %s3019_s22  ;;  %s3291_s19 = scalar_lea.vmem %s3646_s2, %s3019_s22 }
  0x11   : > { %v733_v10 = vpack.c.bf16 %v702_v9, %v701_v8  ;;  %v2746_v12 = vld [vmem:[%s3648_s4 + $0x60] sm:$0xff]  ;;  %v2736_v15 = vld [vmem:[%s3648_s4 + $0x10] sm:$0xff]  ;;  %v704_v18 = vld [vmem:[%s3025_s24 + $0x18] sm:$0xff]  ;;  %s3456_s27 = scalar_lea.vmem %s3659_s15, %s3019_s22 }
  0x12   : > { %990 = vmatpush.bf16.msra.mxu1 %v2740_v3  ;;  %v2744_v16 = vld [vmem:[%s3648_s4 + $0x50] sm:$0xff]  ;;  %v2735_v19 = vld [vmem:[%s3648_s4 + $0x8] sm:$0xff]  ;;  %v2734_v22 = vld [vmem:[%s3648_s4] sm:$0xff] }
  0x13   : > { %1079 = vmatpush.bf16.msra.mxu2 %v2748_v4  ;;  %2555 = vmatmul.msk.bf16.vlgmr.msra.gmra.mxu0 %vm755_vm0, %v733_v10  ;;  %v703_v17 = vld [vmem:[%s3025_s24 + $0x10] sm:$0xff]  ;;  %v2743_v20 = vld [vmem:[%s3648_s4 + $0x48] sm:$0xff]  ;;  %v2742_v23 = vld [vmem:[%s3648_s4 + $0x40] sm:$0xff] }
  0x14   : > { %v734_v21 = vpack.c.bf16 %v704_v18, %v703_v17  ;;  %v605_v24 = vld [vmem:[%s3060_s18] sm:$0xff]  ;;  %v607_v25 = vld [vmem:[%s3060_s18 + $0x10] sm:$0xff]  ;;  %v606_v26 = vld [vmem:[%s3060_s18 + $0x8] sm:$0xff] }
  0x15   : > { %v608_v27 = vld [vmem:[%s3060_s18 + $0x18] sm:$0xff]  ;;  %v669_v28 = vpack.c.bf16 %v607_v25, %v605_v24  ;;  %v2754_v30 = vld [vmem:[%s3653_s9 + $0x8] sm:$0xff]  ;;  %v705_v31 = vld [vmem:[%s3025_s24 + $0x20] sm:$0xff] }
  0x16   : > { %991 = vmatpush.bf16.msra.mxu1 %v2739_v6  ;;  %v670_v29 = vpack.c.bf16 %v608_v27, %v606_v26  ;;  %1530 = vmatpush.bf16.msrb.mxu0 %v2754_v30  ;;  %v706_v32 = vld [vmem:[%s3025_s24 + $0x28] sm:$0xff]  ;;  %v609_v34 = vld [vmem:[%s3060_s18 + $0x20] sm:$0xff]  ;;  %v611_v35 = vld [vmem:[%s3060_s18 + $0x30] sm:$0xff] }
  0x17   : > { %1080 = vmatpush.bf16.msra.mxu2 %v2747_v7  ;;  %v735_v33 = vpack.c.bf16 %v706_v32, %v705_v31  ;;  %v610_v36 = vld [vmem:[%s3060_s18 + $0x28] sm:$0xff]  ;;  %v612_v37 = vld [vmem:[%s3060_s18 + $0x38] sm:$0xff]  ;;  %v671_v38 = vpack.c.bf16 %v611_v35, %v609_v34  ;;  %v707_v40 = vld [vmem:[%s3025_s24 + $0x30] sm:$0xff] }
  0x18   : > { %v672_v39 = vpack.c.bf16 %v612_v37, %v610_v36  ;;  %v708_v41 = vld [vmem:[%s3025_s24 + $0x38] sm:$0xff]  ;;  %v613_v43 = vld [vmem:[%s3060_s18 + $0x40] sm:$0xff]  ;;  %v615_v44 = vld [vmem:[%s3060_s18 + $0x50] sm:$0xff] }
  0x19   : > { %v736_v42 = vpack.c.bf16 %v708_v41, %v707_v40  ;;  %v614_v45 = vld [vmem:[%s3060_s18 + $0x48] sm:$0xff]  ;;  %v616_v46 = vld [vmem:[%s3060_s18 + $0x58] sm:$0xff]  ;;  %v673_v47 = vpack.c.bf16 %v615_v44, %v613_v43  ;;  %v709_v49 = vld [vmem:[%s3025_s24 + $0x40] sm:$0xff] }
  0x1a   : > { %992 = vmatpush.bf16.msra.mxu1 %v2738_v11  ;;  %v674_v48 = vpack.c.bf16 %v616_v46, %v614_v45  ;;  %v710_v50 = vld [vmem:[%s3025_s24 + $0x48] sm:$0xff]  ;;  %v617_v52 = vld [vmem:[%s3060_s18 + $0x60] sm:$0xff]  ;;  %v619_v53 = vld [vmem:[%s3060_s18 + $0x70] sm:$0xff] }
  0x1b   : > { %1081 = vmatpush.bf16.msra.mxu2 %v2746_v12  ;;  %v737_v51 = vpack.c.bf16 %v710_v50, %v709_v49  ;;  %v618_v54 = vld [vmem:[%s3060_s18 + $0x68] sm:$0xff]  ;;  %v620_v55 = vld [vmem:[%s3060_s18 + $0x78] sm:$0xff]  ;;  %v675_v56 = vpack.c.bf16 %v619_v53, %v617_v52  ;;  %v711_v58 = vld [vmem:[%s3025_s24 + $0x50] sm:$0xff] }
  0x1c   : > { %v676_v57 = vpack.c.bf16 %v620_v55, %v618_v54  ;;  %v712_v59 = vld [vmem:[%s3025_s24 + $0x58] sm:$0xff]  ;;  %v621_v61 = vld [vmem:[%s3060_s18 + $0x80] sm:$0xff]  ;;  %v623_v62 = vld [vmem:[%s3060_s18 + $0x90] sm:$0xff] }
  0x1d   : > { %v738_v60 = vpack.c.bf16 %v712_v59, %v711_v58  ;;  %v622_v63 = vld [vmem:[%s3060_s18 + $0x88] sm:$0xff]  ;;  %v624_v0 = vld [vmem:[%s3060_s18 + $0x98] sm:$0xff]  ;;  %v677_v1 = vpack.c.bf16 %v623_v62, %v621_v61  ;;  %v713_v3 = vld [vmem:[%s3025_s24 + $0x60] sm:$0xff] }
  0x1e   : > { %993 = vmatpush.bf16.msra.mxu1 %v2737_v13  ;;  %v678_v2 = vpack.c.bf16 %v624_v0, %v622_v63  ;;  %v714_v4 = vld [vmem:[%s3025_s24 + $0x68] sm:$0xff]  ;;  %v625_v6 = vld [vmem:[%s3060_s18 + $0xa0] sm:$0xff]  ;;  %v627_v7 = vld [vmem:[%s3060_s18 + $0xb0] sm:$0xff] }
  0x1f   : > { %1082 = vmatpush.bf16.msra.mxu2 %v2745_v14  ;;  %v739_v5 = vpack.c.bf16 %v714_v4, %v713_v3  ;;  %v626_v8 = vld [vmem:[%s3060_s18 + $0xa8] sm:$0xff]  ;;  %v628_v9 = vld [vmem:[%s3060_s18 + $0xb8] sm:$0xff]  ;;  %v679_v10 = vpack.c.bf16 %v627_v7, %v625_v6  ;;  %v715_v12 = vld [vmem:[%s3025_s24 + $0x70] sm:$0xff] }
  0x20   : > { %v680_v11 = vpack.c.bf16 %v628_v9, %v626_v8  ;;  %v716_v13 = vld [vmem:[%s3025_s24 + $0x78] sm:$0xff]  ;;  %v630_v17 = vld [vmem:[%s3060_s18 + $0xc8] sm:$0xff]  ;;  %v633_v25 = vld [vmem:[%s3060_s18 + $0xe0] sm:$0xff] }
  0x21   : > { %v740_v14 = vpack.c.bf16 %v716_v13, %v715_v12  ;;  %v632_v18 = vld [vmem:[%s3060_s18 + $0xd8] sm:$0xff]  ;;  %v635_v26 = vld [vmem:[%s3060_s18 + $0xf0] sm:$0xff]  ;;  %v634_v27 = vld [vmem:[%s3060_s18 + $0xe8] sm:$0xff] }
  0x22   : > { %994 = vmatpush.bf16.msra.mxu1 %v2736_v15  ;;  %v629_v15 = vld [vmem:[%s3060_s18 + $0xc0] sm:$0xff]  ;;  %v683_v30 = vpack.c.bf16 %v635_v26, %v633_v25  ;;  %v719_v34 = vld [vmem:[%s3025_s24 + $0x90] sm:$0xff]  ;;  %v720_v35 = vld [vmem:[%s3025_s24 + $0x98] sm:$0xff] }
  0x23   : > { %1083 = vmatpush.bf16.msra.mxu2 %v2744_v16  ;;  %2556 = vmatmul.msk.bf16.gmra.mxu0 %vm755_vm0, %v734_v21  ;;  %v631_v16 = vld [vmem:[%s3060_s18 + $0xd0] sm:$0xff]  ;;  %v717_v21 = vld [vmem:[%s3025_s24 + $0x80] sm:$0xff]  ;;  %v742_v36 = vpack.c.bf16 %v720_v35, %v719_v34  ;;  %v638_v40 = vld [vmem:[%s3060_s18 + $0x108] sm:$0xff] }
  0x24   : > { %v640_v41 = vld [vmem:[%s3060_s18 + $0x118] sm:$0xff]  ;;  %v722_v49 = vld [vmem:[%s3025_s24 + $0xa8] sm:$0xff]  ;;  %v3143_v53 = vld [vmem:[%s3650_s6] ss:$0 sm:$0xff] }
  0x25   : > { %v686_v43 = vpack.c.bf16 %v640_v41, %v638_v40  ;;  %v641_v55 = vld [vmem:[%s3060_s18 + $0x120] sm:$0xff]  ;;  %v642_v58 = vld [vmem:[%s3060_s18 + $0x128] sm:$0xff]  ;;  %v644_v59 = vld [vmem:[%s3060_s18 + $0x138] sm:$0xff] }
  0x26   : > { %995 = vmatpush.bf16.msra.mxu1 %v2735_v19  ;;  %v681_v19 = vpack.c.bf16 %v631_v16, %v629_v15  ;;  %v1646_v7 = vld [vmem:[%s3656_s12] sm:$0xf]  ;;  %v723_v15 = vld [vmem:[%s3025_s24 + $0xb0] sm:$0xff]  ;;  %v724_v16 = vld [vmem:[%s3025_s24 + $0xb8] sm:$0xff] }
  0x27   : > { %1084 = vmatpush.bf16.msra.mxu2 %v2743_v20  ;;  %v682_v20 = vpack.c.bf16 %v632_v18, %v630_v17  ;;  %v1647_v8 = vld [vmem:[%s3657_s13] sm:$0xf]  ;;  %v1764_v9 = vsel %vm1762_vm1, %v1646_v7, 0  ;;  %v648_v25 = vld [vmem:[%s3060_s18 + $0x158] sm:$0xff]  ;;  %v726_v40 = vld [vmem:[%s3025_s24 + $0xc8] sm:$0xff] }
  0x28   : > { %v653_v7 = vld [vmem:[%s3060_s18 + $0x180] sm:$0xff] }
  0x2a   : > { %996 = vmatpush.bf16.msra.mxu1 %v2734_v22  ;;  %v718_v22 = vld [vmem:[%s3025_s24 + $0x88] sm:$0xff] }
  0x2b   : > { %1085 = vmatpush.bf16.msra.mxu2 %v2742_v23  ;;  %v741_v23 = vpack.c.bf16 %v718_v22, %v717_v21  ;;  %v645_v22 = vld [vmem:[%s3060_s18 + $0x140] sm:$0xff] }
  0x2d   : > { %997 = vmatmul.bf16.vlgmr.msra.gmra.mxu1 %v669_v28  ;;  %v636_v28 = vld [vmem:[%s3060_s18 + $0xf8] sm:$0xff] }
  0x2e   : > { %1086 = vmatmul.bf16.vlgmr.msra.gmra.mxu2 %v670_v29  ;;  %v2752_v29 = vld [vmem:[%s3651_s7 + $0x8] sm:$0xff]  ;;  %v684_v31 = vpack.c.bf16 %v636_v28, %v634_v27 }
  0x2f   : > { %1325 = vmatpush.bf16.msra.mxu3 %v2752_v29 }
  0x33   : > { %2557 = vmatmul.msk.bf16.gmra.mxu0 %vm755_vm0, %v735_v33  ;;  %v2751_v33 = vld [vmem:[%s3651_s7] sm:$0xff] }
  0x34   : > { %1326 = vmatpush.bf16.msra.mxu3 %v2751_v33 }
  0x38   : > { %1773 = vmatpush.bf16.msrb.mxu3 %v1764_v9  ;;  %v654_v9 = vld [vmem:[%s3060_s18 + $0x188] sm:$0xff] }
  0x3d   : > { %1002 = vmatmul.bf16.gmra.mxu1 %v671_v38  ;;  %v637_v38 = vld [vmem:[%s3060_s18 + $0x100] sm:$0xff] }
  0x3e   : > { %1091 = vmatmul.bf16.gmra.mxu2 %v672_v39  ;;  %v639_v39 = vld [vmem:[%s3060_s18 + $0x110] sm:$0xff] }
  0x43   : > { %2558 = vmatmul.msk.bf16.gmra.mxu0 %vm755_vm0, %v736_v42  ;;  %v685_v42 = vpack.c.bf16 %v639_v39, %v637_v38  ;;  %v725_v39 = vld [vmem:[%s3025_s24 + $0xc0] sm:$0xff] }
  0x4d   : > { %1007 = vmatmul.bf16.gmra.mxu1 %v673_v47 }
  0x4e   : > { %1096 = vmatmul.bf16.gmra.mxu2 %v674_v48  ;;  %v721_v48 = vld [vmem:[%s3025_s24 + $0xa0] sm:$0xff] }
  0x53   : > { %2559 = vmatmul.msk.bf16.gmra.mxu0 %vm755_vm0, %v737_v51  ;;  %v743_v51 = vpack.c.bf16 %v722_v49, %v721_v48  ;;  %v650_v48 = vld [vmem:[%s3060_s18 + $0x168] sm:$0xff]  ;;  %v652_v49 = vld [vmem:[%s3060_s18 + $0x178] sm:$0xff] }
  0x5d   : > { %1012 = vmatmul.bf16.gmra.mxu1 %v675_v56  ;;  %v2753_v56 = vld [vmem:[%s3653_s9] sm:$0xff] }
  0x5e   : > { %1101 = vmatmul.bf16.gmra.mxu2 %v676_v57  ;;  %v643_v57 = vld [vmem:[%s3060_s18 + $0x130] sm:$0xff]  ;;  %1531 = vmatpush.bf16.msrb.mxu0 %v2753_v56  ;;  %v692_v56 = vpack.c.bf16 %v652_v49, %v650_v48  ;;  %v732_v49 = vld [vmem:[%s3025_s24 + $0xf8] sm:$0xff] }
  0x5f   : > { %v687_v0 = vpack.c.bf16 %v643_v57, %v641_v55  ;;  %v731_v48 = vld [vmem:[%s3025_s24 + $0xf0] sm:$0xff] }
  0x63   : > { %2560 = vmatmul.msk.bf16.gmra.mxu0 %vm755_vm0, %v738_v60 }
  0x6d   : > { %1017 = vmatmul.bf16.gmra.mxu1 %v677_v1  ;;  %v688_v1 = vpack.c.bf16 %v644_v59, %v642_v58 }
  0x6e   : > { %1106 = vmatmul.bf16.gmra.mxu2 %v678_v2 }
  0x73   : > { %2561 = vmatmul.msk.bf16.gmra.mxu0 %vm755_vm0, %v739_v5 }
  0x7d   : > { %1022 = vmatmul.bf16.gmra.mxu1 %v679_v10  ;;  %v2092_v10 = vsel %vm1762_vm1, %v1647_v8, 0  ;;  %v655_v8 = vld [vmem:[%s3060_s18 + $0x190] sm:$0xff] }
  0x7e   : > { %1111 = vmatmul.bf16.gmra.mxu2 %v680_v11  ;;  %v1645_v11 = vld [vmem:[%s3655_s11] sm:$0xf] }
  0x7f   : > { %2101 = vmatpush.bf16.msrb.mxu2 %v2092_v10  ;;  %v1904_v13 = vsel %vm1762_vm1, %v1645_v11, 0  ;;  %v656_v10 = vld [vmem:[%s3060_s18 + $0x198] sm:$0xff] }
  0x80   : > { %1913 = vmatpush.bf16.msrb.mxu1 %v1904_v13 }
  0x83   : > { %2562 = vmatmul.msk.bf16.gmra.mxu0 %vm755_vm0, %v740_v14 }
  0x8d   : > { %1027 = vmatmul.bf16.gmra.mxu1 %v681_v19  ;;  %v744_v19 = vpack.c.bf16 %v724_v16, %v723_v15  ;;  %v693_v15 = vpack.c.bf16 %v655_v8, %v653_v7  ;;  %v694_v16 = vpack.c.bf16 %v656_v10, %v654_v9 }
  0x8e   : > { %1116 = vmatmul.bf16.gmra.mxu2 %v682_v20 }
  0x90   : > { %v813_v24 = vpop.f32.mrf.mxu0 }
  0x93   : > { %2563 = vmatmul.msk.bf16.gmra.mxu0 %vm755_vm0, %v741_v23  ;;  %v647_v23 = vld [vmem:[%s3060_s18 + $0x150] sm:$0xff] }
  0x98   : > { %v815_v32 = vpop.f32.mrf.mxu0 }
  0x9d   : > { %1032 = vmatmul.bf16.gmra.mxu1 %v683_v30  ;;  %v689_v30 = vpack.c.bf16 %v647_v23, %v645_v22 }
  0x9e   : > { %1121 = vmatmul.bf16.gmra.mxu2 %v684_v31 }
  0xa0   : > { %v818_v37 = vpop.f32.mrf.mxu0 }
  0xa3   : > { %2564 = vmatmul.msk.bf16.gmra.mxu0 %vm755_vm0, %v742_v36 }
  0xa8   : > { %v820_v45 = vpop.f32.mrf.mxu0 }
  0xaa   : > { %v998_v44 = vpop.f32.mrf.mxu1 }
  0xab   : > { %v999_v46 = vadd.f32 %v998_v44, %v813_v24  ;;  %v646_v24 = vld [vmem:[%s3060_s18 + $0x148] sm:$0xff] }
  0xac   : > { %v690_v31 = vpack.c.bf16 %v648_v25, %v646_v24  ;;  %v729_v24 = vld [vmem:[%s3025_s24 + $0xe0] sm:$0xff]  ;;  %v730_v25 = vld [vmem:[%s3025_s24 + $0xe8] sm:$0xff] }
  0xad   : > { %1037 = vmatmul.bf16.gmra.mxu1 %v685_v42 }
  0xae   : > { %1126 = vmatmul.bf16.gmra.mxu2 %v686_v43  ;;  %v745_v43 = vpack.c.bf16 %v726_v40, %v725_v39 }
  0xb0   : > { %v3145_v54 = vpop.f32.mrf.mxu0 }
  0xb1   : > { %v1087_v47 = vpop.f32.mrf.mxu2 }
  0xb2   : > { %v1000_v50 = vpop.f32.mrf.mxu1  ;;  %v1088_v52 = vadd.f32 %v1087_v47, %v999_v46  ;;  %v649_v46 = vld [vmem:[%s3060_s18 + $0x160] sm:$0xff]  ;;  %v651_v47 = vld [vmem:[%s3060_s18 + $0x170] sm:$0xff] }
  0xb3   : > { %v1001_v60 = vadd.f32 %v1000_v50, %v815_v32  ;;  %2565 = vmatmul.msk.bf16.gmra.mxu0 %vm755_vm0, %v743_v51 }
  0xb4   : > { %v1170_v61 = vadd.f32 %v3143_v53, %v1088_v52 }
  0xb6   : > { %v1202_v4 = vmax.f32 %v1170_v61, 0.0 }
  0xb8   : > { %v825_v5 = vpop.f32.mrf.mxu0 }
  0xb9   : > { %v1089_v62 = vpop.f32.mrf.mxu2 }
  0xba   : > { %v1090_v63 = vadd.f32 %v1089_v62, %v1001_v60  ;;  %v1003_v2 = vpop.f32.mrf.mxu1 }
  0xbb   : > { %v1004_v17 = vadd.f32 %v1003_v2, %v818_v37 }
  0xbc   : > { %v1171_v3 = vadd.f32 %v3143_v53, %v1090_v63 }
  0xbd   : > { %1042 = vmatmul.bf16.gmra.mxu1 %v687_v0  ;;  %v727_v0 = vld [vmem:[%s3025_s24 + $0xd0] sm:$0xff] }
  0xbe   : > { %v1203_v6 = vmax.f32 %v1171_v3, 0.0  ;;  %1131 = vmatmul.bf16.gmra.mxu2 %v688_v1  ;;  %v728_v1 = vld [vmem:[%s3025_s24 + $0xd8] sm:$0xff] }
  0xc0   : > { %v1239_v12 = vpack.c.bf16 %v1203_v6, %v1202_v4  ;;  %v828_v20 = vpop.f32.mrf.mxu0  ;;  %v746_v4 = vpack.c.bf16 %v728_v1, %v727_v0 }
  0xc1   : > { %v1092_v14 = vpop.f32.mrf.mxu2 }
  0xc2   : > { %2643 = vmatmul.msk.bf16.vlgmr.msra.gmra.mxu3 %vm1270_vm2, %v1239_v12  ;;  %v1005_v18 = vpop.f32.mrf.mxu1  ;;  %v1093_v21 = vadd.f32 %v1092_v14, %v1004_v17 }
  0xc3   : > { %v1006_v26 = vadd.f32 %v1005_v18, %v820_v45  ;;  %2566 = vmatmul.msk.bf16.gmra.mxu0 %vm755_vm0, %v744_v19 }
  0xc4   : > { %v1172_v28 = vadd.f32 %v3143_v53, %v1093_v21 }
  0xc6   : > { %v1204_v35 = vmax.f32 %v1172_v28, 0.0  ;;  %v747_v28 = vpack.c.bf16 %v730_v25, %v729_v24 }
  0xc8   : > { %v830_v34 = vpop.f32.mrf.mxu0 }
  0xc9   : > { %v1094_v27 = vpop.f32.mrf.mxu2 }
  0xca   : > { %v1095_v29 = vadd.f32 %v1094_v27, %v1006_v26  ;;  %v1008_v32 = vpop.f32.mrf.mxu1 }
  0xcb   : > { %v1009_v41 = vadd.f32 %v1008_v32, %v3145_v54  ;;  %v691_v54 = vpack.c.bf16 %v651_v47, %v649_v46  ;;  %v659_v32 = vld [vmem:[%s3060_s18 + $0x1b0] sm:$0xff] }
  0xcc   : > { %v1173_v33 = vadd.f32 %v3143_v53, %v1095_v29 }
  0xcd   : > { %1047 = vmatmul.bf16.gmra.mxu1 %v689_v30 }
  0xce   : > { %v1205_v36 = vmax.f32 %v1173_v33, 0.0  ;;  %1136 = vmatmul.bf16.gmra.mxu2 %v690_v31  ;;  %v657_v31 = vld [vmem:[%s3060_s18 + $0x1a0] sm:$0xff]  ;;  %v658_v33 = vld [vmem:[%s3060_s18 + $0x1a8] sm:$0xff] }
  0xcf   : > { %v695_v39 = vpack.c.bf16 %v659_v32, %v657_v31 }
  0xd0   : > { %v1240_v37 = vpack.c.bf16 %v1205_v36, %v1204_v35  ;;  %v833_v44 = vpop.f32.mrf.mxu0 }
  0xd1   : > { %v1097_v38 = vpop.f32.mrf.mxu2 }
  0xd2   : > { %2644 = vmatmul.msk.bf16.gmra.mxu3 %vm1270_vm2, %v1240_v37  ;;  %v1010_v42 = vpop.f32.mrf.mxu1  ;;  %v1098_v45 = vadd.f32 %v1097_v38, %v1009_v41 }
  0xd3   : > { %v1011_v50 = vadd.f32 %v1010_v42, %v825_v5  ;;  %2567 = vmatmul.msk.bf16.gmra.mxu0 %vm755_vm0, %v745_v43 }
  0xd4   : > { %v1174_v52 = vadd.f32 %v3143_v53, %v1098_v45 }
  0xd6   : > { %v1206_v60 = vmax.f32 %v1174_v52, 0.0  ;;  %v748_v52 = vpack.c.bf16 %v732_v49, %v731_v48 }
  0xd8   : > { %v835_v59 = vpop.f32.mrf.mxu0 }
  0xd9   : > { %v1099_v51 = vpop.f32.mrf.mxu2 }
  0xda   : > { %v1100_v55 = vadd.f32 %v1099_v51, %v1011_v50  ;;  %v1013_v57 = vpop.f32.mrf.mxu1 }
  0xdb   : > { %v1014_v2 = vadd.f32 %v1013_v57, %v828_v20  ;;  %v663_v57 = vld [vmem:[%s3060_s18 + $0x1d0] sm:$0xff] }
  0xdc   : > { %v1175_v58 = vadd.f32 %v3143_v53, %v1100_v55 }
  0xdd   : > { %1052 = vmatmul.bf16.gmra.mxu1 %v691_v54 }
  0xde   : > { %v1207_v61 = vmax.f32 %v1175_v58, 0.0  ;;  %1141 = vmatmul.bf16.gmra.mxu2 %v692_v56  ;;  %v661_v56 = vld [vmem:[%s3060_s18 + $0x1c0] sm:$0xff]  ;;  %v662_v58 = vld [vmem:[%s3060_s18 + $0x1c8] sm:$0xff] }
  0xdf   : > { %v697_v0 = vpack.c.bf16 %v663_v57, %v661_v56 }
  0xe0   : > { %v1241_v62 = vpack.c.bf16 %v1207_v61, %v1206_v60  ;;  %v838_v5 = vpop.f32.mrf.mxu0 }
  0xe1   : > { %v1102_v63 = vpop.f32.mrf.mxu2 }
  0xe2   : > { %2645 = vmatmul.msk.bf16.gmra.mxu3 %vm1270_vm2, %v1241_v62  ;;  %v1015_v3 = vpop.f32.mrf.mxu1  ;;  %v1103_v6 = vadd.f32 %v1102_v63, %v1014_v2 }
  0xe3   : > { %v1016_v11 = vadd.f32 %v1015_v3, %v830_v34  ;;  %2568 = vmatmul.msk.bf16.gmra.mxu0 %vm755_vm0, %v746_v4  ;;  %v660_v34 = vld [vmem:[%s3060_s18 + $0x1b8] sm:$0xff] }
  0xe4   : > { %v1176_v13 = vadd.f32 %v3143_v53, %v1103_v6  ;;  %v696_v40 = vpack.c.bf16 %v660_v34, %v658_v33 }
  0xe6   : > { %v1208_v20 = vmax.f32 %v1176_v13, 0.0  ;;  %v665_v13 = vld [vmem:[%s3060_s18 + $0x1e0] sm:$0xff] }
  0xe8   : > { %v840_v19 = vpop.f32.mrf.mxu0 }
  0xe9   : > { %v1104_v12 = vpop.f32.mrf.mxu2 }
  0xea   : > { %v1105_v14 = vadd.f32 %v1104_v12, %v1016_v11  ;;  %v1018_v17 = vpop.f32.mrf.mxu1 }
  0xeb   : > { %v1019_v26 = vadd.f32 %v1018_v17, %v833_v44 }
  0xec   : > { %v1177_v18 = vadd.f32 %v3143_v53, %v1105_v14  ;;  %v667_v14 = vld [vmem:[%s3060_s18 + $0x1f0] sm:$0xff] }
  0xed   : > { %1057 = vmatmul.bf16.gmra.mxu1 %v693_v15  ;;  %v666_v15 = vld [vmem:[%s3060_s18 + $0x1e8] sm:$0xff] }
  0xee   : > { %v1209_v21 = vmax.f32 %v1177_v18, 0.0  ;;  %1146 = vmatmul.bf16.gmra.mxu2 %v694_v16  ;;  %v668_v16 = vld [vmem:[%s3060_s18 + $0x1f8] sm:$0xff] }
  0xf0   : > { %v1242_v22 = vpack.c.bf16 %v1209_v21, %v1208_v20  ;;  %v843_v29 = vpop.f32.mrf.mxu0  ;;  %v699_v21 = vpack.c.bf16 %v667_v14, %v665_v13 }
  0xf1   : > { %v1107_v23 = vpop.f32.mrf.mxu2 }
  0xf2   : > { %2646 = vmatmul.msk.bf16.gmra.mxu3 %vm1270_vm2, %v1242_v22  ;;  %v1020_v27 = vpop.f32.mrf.mxu1  ;;  %v1108_v30 = vadd.f32 %v1107_v23, %v1019_v26  ;;  %v700_v22 = vpack.c.bf16 %v668_v16, %v666_v15 }
  0xf3   : > { %v1021_v35 = vadd.f32 %v1020_v27, %v835_v59  ;;  %2569 = vmatmul.msk.bf16.gmra.mxu0 %vm755_vm0, %v747_v28  ;;  %v664_v59 = vld [vmem:[%s3060_s18 + $0x1d8] sm:$0xff] }
  0xf4   : > { %v1178_v37 = vadd.f32 %v3143_v53, %v1108_v30  ;;  %v698_v1 = vpack.c.bf16 %v664_v59, %v662_v58 }
  0xf6   : > { %v1210_v44 = vmax.f32 %v1178_v37, 0.0 }
  0xf8   : > { %v845_v43 = vpop.f32.mrf.mxu0 }
  0xf9   : > { %v1109_v36 = vpop.f32.mrf.mxu2 }
  0xfa   : > { %v1110_v38 = vadd.f32 %v1109_v36, %v1021_v35  ;;  %v1023_v41 = vpop.f32.mrf.mxu1 }
  0xfb   : > { %v1024_v50 = vadd.f32 %v1023_v41, %v838_v5 }
  0xfc   : > { %v1179_v42 = vadd.f32 %v3143_v53, %v1110_v38 }
  0xfd   : > { %1062 = vmatmul.bf16.gmra.mxu1 %v695_v39 }
  0xfe   : > { %v1211_v45 = vmax.f32 %v1179_v42, 0.0  ;;  %1151 = vmatmul.bf16.gmra.mxu2 %v696_v40 }
 0x100   : > { %v1243_v46 = vpack.c.bf16 %v1211_v45, %v1210_v44  ;;  %v848_v55 = vpop.f32.mrf.mxu0 }
 0x101   : > { %v1112_v47 = vpop.f32.mrf.mxu2 }
 0x102   : > { %2647 = vmatmul.msk.bf16.gmra.mxu3 %vm1270_vm2, %v1243_v46  ;;  %v1025_v51 = vpop.f32.mrf.mxu1  ;;  %v1113_v54 = vadd.f32 %v1112_v47, %v1024_v50 }
 0x103   : > { %v1026_v60 = vadd.f32 %v1025_v51, %v840_v19  ;;  %2570 = vmatmul.msk.bf16.gmra.mxu0 %vm755_vm0, %v748_v52 }
 0x104   : > { %v1180_v62 = vadd.f32 %v3143_v53, %v1113_v54 }
 0x106   : > { %v1212_v5 = vmax.f32 %v1180_v62, 0.0 }
 0x108   : > { %v850_v4 = vpop.f32.mrf.mxu0 }
 0x109   : > { %v1114_v61 = vpop.f32.mrf.mxu2 }
 0x10a   : > { %v1115_v63 = vadd.f32 %v1114_v61, %v1026_v60  ;;  %v1028_v2 = vpop.f32.mrf.mxu1 }
 0x10b   : > { %v1029_v9 = vadd.f32 %v1028_v2, %v843_v29  ;;  %v3234_v2 = vld [vmem:[%s3652_s8] ss:$0 sm:$0xff] }
 0x10c   : > { %v1181_v3 = vadd.f32 %v3143_v53, %v1115_v63 }
 0x10d   : > { %1067 = vmatmul.bf16.gmra.mxu1 %v697_v0 }
 0x10e   : > { %v1213_v6 = vmax.f32 %v1181_v3, 0.0  ;;  %1156 = vmatmul.bf16.gmra.mxu2 %v698_v1 }
 0x110   : > { %v1244_v7 = vpack.c.bf16 %v1213_v6, %v1212_v5  ;;  %v853_v11 = vpop.f32.mrf.mxu0 }
 0x111   : > { %v1117_v8 = vpop.f32.mrf.mxu2 }
 0x112   : > { %2648 = vmatmul.msk.bf16.gmra.mxu3 %vm1270_vm2, %v1244_v7  ;;  %v1030_v10 = vpop.f32.mrf.mxu1  ;;  %v1118_v12 = vadd.f32 %v1117_v8, %v1029_v9 }
 0x113   : > { %v1031_v17 = vadd.f32 %v1030_v10, %v845_v43 }
 0x114   : > { %v1182_v19 = vadd.f32 %v3143_v53, %v1118_v12 }
 0x116   : > { %v1214_v26 = vmax.f32 %v1182_v19, 0.0 }
 0x118   : > { %v855_v25 = vpop.f32.mrf.mxu0 }
 0x119   : > { %v1119_v18 = vpop.f32.mrf.mxu2 }
 0x11a   : > { %v1120_v20 = vadd.f32 %v1119_v18, %v1031_v17  ;;  %v1033_v23 = vpop.f32.mrf.mxu1 }
 0x11b   : > { %v1034_v30 = vadd.f32 %v1033_v23, %v848_v55 }
 0x11c   : > { %v1183_v24 = vadd.f32 %v3143_v53, %v1120_v20 }
 0x11d   : > { %1072 = vmatmul.bf16.gmra.mxu1 %v699_v21 }
 0x11e   : > { %v1215_v27 = vmax.f32 %v1183_v24, 0.0  ;;  %1161 = vmatmul.bf16.gmra.mxu2 %v700_v22 }
 0x120   : > { %v1245_v28 = vpack.c.bf16 %v1215_v27, %v1214_v26  ;;  %v858_v32 = vpop.f32.mrf.mxu0 }
 0x121   : > { %v1122_v29 = vpop.f32.mrf.mxu2 }
 0x122   : > { %2649 = vmatmul.msk.bf16.gmra.mxu3 %vm1270_vm2, %v1245_v28  ;;  %v1035_v31 = vpop.f32.mrf.mxu1  ;;  %v1123_v33 = vadd.f32 %v1122_v29, %v1034_v30 }
 0x123   : > { %v1036_v34 = vadd.f32 %v1035_v31, %v850_v4 }
 0x124   : > { %v1184_v36 = vadd.f32 %v3143_v53, %v1123_v33 }
 0x126   : > { %v1216_v40 = vmax.f32 %v1184_v36, 0.0 }
 0x128   : > { %v860_v42 = vpop.f32.mrf.mxu0 }
 0x129   : > { %v1124_v35 = vpop.f32.mrf.mxu2 }
 0x12a   : > { %v1125_v37 = vadd.f32 %v1124_v35, %v1036_v34  ;;  %v1038_v38 = vpop.f32.mrf.mxu1 }
 0x12b   : > { %v1039_v45 = vadd.f32 %v1038_v38, %v853_v11 }
 0x12c   : > { %v1185_v39 = vadd.f32 %v3143_v53, %v1125_v37 }
 0x12e   : > { %v1217_v41 = vmax.f32 %v1185_v39, 0.0 }
 0x130   : > { %v1246_v43 = vpack.c.bf16 %v1217_v41, %v1216_v40  ;;  %v863_v50 = vpop.f32.mrf.mxu0 }
 0x131   : > { %v1127_v44 = vpop.f32.mrf.mxu2 }
 0x132   : > { %2650 = vmatmul.msk.bf16.gmra.mxu3 %vm1270_vm2, %v1246_v43  ;;  %v1040_v46 = vpop.f32.mrf.mxu1  ;;  %v1128_v47 = vadd.f32 %v1127_v44, %v1039_v45 }
 0x133   : > { %v1041_v48 = vadd.f32 %v1040_v46, %v855_v25 }
 0x134   : > { %v1186_v51 = vadd.f32 %v3143_v53, %v1128_v47 }
 0x136   : > { %v1218_v56 = vmax.f32 %v1186_v51, 0.0 }
 0x138   : > { %v865_v62 = vpop.f32.mrf.mxu0 }
 0x139   : > { %v1129_v49 = vpop.f32.mrf.mxu2 }
 0x13a   : > { %v1130_v52 = vadd.f32 %v1129_v49, %v1041_v48  ;;  %v1043_v55 = vpop.f32.mrf.mxu1 }
 0x13b   : > { %v1044_v60 = vadd.f32 %v1043_v55, %v858_v32 }
 0x13c   : > { %v1187_v54 = vadd.f32 %v3143_v53, %v1130_v52 }
 0x13e   : > { %v1219_v57 = vmax.f32 %v1187_v54, 0.0 }
 0x140   : > { %v1247_v58 = vpack.c.bf16 %v1219_v57, %v1218_v56  ;;  %v868_v10 = vpop.f32.mrf.mxu0 }
 0x141   : > { %v1132_v59 = vpop.f32.mrf.mxu2 }
 0x142   : > { %2651 = vmatmul.msk.bf16.gmra.mxu3 %vm1270_vm2, %v1247_v58  ;;  %v1045_v61 = vpop.f32.mrf.mxu1  ;;  %v1133_v0 = vadd.f32 %v1132_v59, %v1044_v60 }
 0x143   : > { %v1046_v1 = vadd.f32 %v1045_v61, %v860_v42 }
 0x144   : > { %v1188_v4 = vadd.f32 %v3143_v53, %v1133_v0 }
 0x145   : > { %v1328_v63 = vpop.f32.mrf.mxu3 }
 0x146   : > { %v1329_v7 = vadd.f32 %v3234_v2, %v1328_v63  ;;  %v1220_v11 = vmax.f32 %v1188_v4, 0.0 }
 0x148   : > { %v1408_v14 = vmax.f32 %v1329_v7, 0.0  ;;  %v870_v23 = vpop.f32.mrf.mxu0 }
 0x149   : > { %v1134_v3 = vpop.f32.mrf.mxu2 }
 0x14a   : > { %v1135_v5 = vadd.f32 %v1134_v3, %v1046_v1  ;;  %v1048_v6 = vpop.f32.mrf.mxu1 }
 0x14b   : > { %v1049_v18 = vadd.f32 %v1048_v6, %v863_v50 }
 0x14c   : > { %v1189_v8 = vadd.f32 %v3143_v53, %v1135_v5 }
 0x14d   : > { %v1330_v9 = vpop.f32.mrf.mxu3 }
 0x14e   : > { %v1221_v12 = vmax.f32 %v1189_v8, 0.0  ;;  %v1331_v13 = vadd.f32 %v3234_v2, %v1330_v9 }
 0x150   : > { %v1409_v15 = vmax.f32 %v1331_v13, 0.0  ;;  %v1248_v16 = vpack.c.bf16 %v1221_v12, %v1220_v11  ;;  %v873_v39 = vpop.f32.mrf.mxu0 }
 0x151   : > { %v1137_v17 = vpop.f32.mrf.mxu2 }
 0x152   : > { %v1445_v19 = vpack.c.bf16 %v1409_v15, %v1408_v14  ;;  %2652 = vmatmul.msk.bf16.gmra.mxu3 %vm1270_vm2, %v1248_v16  ;;  %v1050_v20 = vpop.f32.mrf.mxu1  ;;  %v1138_v22 = vadd.f32 %v1137_v17, %v1049_v18 }
 0x153   : > { %v1051_v24 = vadd.f32 %v1050_v20, %v865_v62 }
 0x154   : > { %2667 = vmatmul.msk.bf16.vlgmr.msrb.gmra.mxu0 %vm1270_vm2, %v1445_v19  ;;  %v1190_v26 = vadd.f32 %v3143_v53, %v1138_v22 }
 0x155   : > { %v1333_v21 = vpop.f32.mrf.mxu3 }
 0x156   : > { %v1334_v29 = vadd.f32 %v3234_v2, %v1333_v21  ;;  %v1222_v32 = vmax.f32 %v1190_v26, 0.0 }
 0x158   : > { %v1410_v35 = vmax.f32 %v1334_v29, 0.0  ;;  %v875_v50 = vpop.f32.mrf.mxu0 }
 0x159   : > { %v1139_v25 = vpop.f32.mrf.mxu2 }
 0x15a   : > { %v1140_v27 = vadd.f32 %v1139_v25, %v1051_v24  ;;  %v1053_v28 = vpop.f32.mrf.mxu1 }
 0x15b   : > { %v1054_v40 = vadd.f32 %v1053_v28, %v868_v10 }
 0x15c   : > { %v1191_v30 = vadd.f32 %v3143_v53, %v1140_v27 }
 0x15d   : > { %v1335_v31 = vpop.f32.mrf.mxu3 }
 0x15e   : > { %v1223_v33 = vmax.f32 %v1191_v30, 0.0  ;;  %v1336_v34 = vadd.f32 %v3234_v2, %v1335_v31 }
 0x160   : > { %v1411_v36 = vmax.f32 %v1336_v34, 0.0  ;;  %v1249_v37 = vpack.c.bf16 %v1223_v33, %v1222_v32  ;;  %v878_v3 = vpop.f32.mrf.mxu0 }
 0x161   : > { %v1142_v38 = vpop.f32.mrf.mxu2 }
 0x162   : > { %v1446_v41 = vpack.c.bf16 %v1411_v36, %v1410_v35  ;;  %2653 = vmatmul.msk.bf16.gmra.mxu3 %vm1270_vm2, %v1249_v37  ;;  %v1055_v42 = vpop.f32.mrf.mxu1  ;;  %v1143_v44 = vadd.f32 %v1142_v38, %v1054_v40 }
 0x163   : > { %v1056_v45 = vadd.f32 %v1055_v42, %v870_v23 }
 0x164   : > { %2668 = vmatmul.msk.bf16.gmra.mxu0 %vm1270_vm2, %v1446_v41  ;;  %v1192_v47 = vadd.f32 %v3143_v53, %v1143_v44 }
 0x165   : > { %v1338_v43 = vpop.f32.mrf.mxu3 }
 0x166   : > { %v1339_v51 = vadd.f32 %v3234_v2, %v1338_v43  ;;  %v1224_v54 = vmax.f32 %v1192_v47, 0.0 }
 0x168   : > { %v1412_v58 = vmax.f32 %v1339_v51, 0.0  ;;  %v880_v16 = vpop.f32.mrf.mxu0 }
 0x169   : > { %v1144_v46 = vpop.f32.mrf.mxu2 }
 0x16a   : > { %v1145_v48 = vadd.f32 %v1144_v46, %v1056_v45  ;;  %v1058_v49 = vpop.f32.mrf.mxu1 }
 0x16b   : > { %v1059_v62 = vadd.f32 %v1058_v49, %v873_v39 }
 0x16c   : > { %v1193_v52 = vadd.f32 %v3143_v53, %v1145_v48 }
 0x16d   : > { %v1340_v55 = vpop.f32.mrf.mxu3 }
 0x16e   : > { %v1225_v56 = vmax.f32 %v1193_v52, 0.0  ;;  %v1341_v57 = vadd.f32 %v3234_v2, %v1340_v55 }
 0x170   : > { %v1413_v59 = vmax.f32 %v1341_v57, 0.0  ;;  %v1250_v60 = vpack.c.bf16 %v1225_v56, %v1224_v54  ;;  %v883_v27 = vpop.f32.mrf.mxu0 }
 0x171   : > { %v1147_v61 = vpop.f32.mrf.mxu2 }
 0x172   : > { %v1447_v63 = vpack.c.bf16 %v1413_v59, %v1412_v58  ;;  %2654 = vmatmul.msk.bf16.gmra.mxu3 %vm1270_vm2, %v1250_v60  ;;  %v1060_v0 = vpop.f32.mrf.mxu1  ;;  %v1148_v4 = vadd.f32 %v1147_v61, %v1059_v62 }
 0x173   : > { %v1061_v5 = vadd.f32 %v1060_v0, %v875_v50 }
 0x174   : > { %2669 = vmatmul.msk.bf16.gmra.mxu0 %vm1270_vm2, %v1447_v63  ;;  %v1194_v7 = vadd.f32 %v3143_v53, %v1148_v4 }
 0x175   : > { %v1343_v1 = vpop.f32.mrf.mxu3 }
 0x176   : > { %v1344_v10 = vadd.f32 %v3234_v2, %v1343_v1  ;;  %v1226_v13 = vmax.f32 %v1194_v7, 0.0 }
 0x178   : > { %v1414_v17 = vmax.f32 %v1344_v10, 0.0  ;;  %v885_v44 = vpop.f32.mrf.mxu0 }
 0x179   : > { %v1149_v6 = vpop.f32.mrf.mxu2 }
 0x17a   : > { %v1150_v8 = vadd.f32 %v1149_v6, %v1061_v5  ;;  %v1063_v9 = vpop.f32.mrf.mxu1 }
 0x17b   : > { %v1064_v21 = vadd.f32 %v1063_v9, %v878_v3 }
 0x17c   : > { %v1195_v11 = vadd.f32 %v3143_v53, %v1150_v8 }
 0x17d   : > { %v1345_v12 = vpop.f32.mrf.mxu3 }
 0x17e   : > { %v1227_v14 = vmax.f32 %v1195_v11, 0.0  ;;  %v1346_v15 = vadd.f32 %v3234_v2, %v1345_v12 }
 0x180   : > { %v1251_v18 = vpack.c.bf16 %v1227_v14, %v1226_v13  ;;  %v1415_v19 = vmax.f32 %v1346_v15, 0.0  ;;  %v888_v56 = vpop.f32.mrf.mxu0 }
 0x181   : > { %v1152_v20 = vpop.f32.mrf.mxu2 }
 0x182   : > { %v1448_v22 = vpack.c.bf16 %v1415_v19, %v1414_v17  ;;  %2655 = vmatmul.msk.bf16.gmra.mxu3 %vm1270_vm2, %v1251_v18  ;;  %v1065_v23 = vpop.f32.mrf.mxu1  ;;  %v1153_v25 = vadd.f32 %v1152_v20, %v1064_v21  ;;  %v1995_v21 = vld [vmem:[%s3280_s16] sm:$0xff] }
 0x183   : > { %v1066_v26 = vadd.f32 %v1065_v23, %v880_v16 }
 0x184   : > { %2670 = vmatmul.msk.bf16.gmra.mxu0 %vm1270_vm2, %v1448_v22  ;;  %v1196_v29 = vadd.f32 %v3143_v53, %v1153_v25  ;;  %v1996_v22 = vld [vmem:[%s3280_s16 + $0x8] sm:$0xff]  ;;  %v1665_v25 = vld [vmem:[%s3291_s19] sm:$0xff] }
 0x185   : > { %v1348_v24 = vpop.f32.mrf.mxu3 }
 0x186   : > { %v1349_v32 = vadd.f32 %v3234_v2, %v1348_v24  ;;  %v1228_v35 = vmax.f32 %v1196_v29, 0.0 }
 0x188   : > { %v1416_v38 = vmax.f32 %v1349_v32, 0.0  ;;  %v890_v7 = vpop.f32.mrf.mxu0 }
 0x189   : > { %v1154_v28 = vpop.f32.mrf.mxu2 }
 0x18a   : > { %v1155_v30 = vadd.f32 %v1154_v28, %v1066_v26  ;;  %v1068_v31 = vpop.f32.mrf.mxu1  ;;  %v1666_v26 = vld [vmem:[%s3291_s19 + $0x8] sm:$0xff] }
 0x18b   : > { %v1069_v42 = vadd.f32 %v1068_v31, %v883_v27 }
 0x18c   : > { %v1197_v33 = vadd.f32 %v3143_v53, %v1155_v30  ;;  %v1697_v30 = vpack.c.bf16 %v1666_v26, %v1665_v25  ;;  %v2003_v25 = vld [vmem:[%s3280_s16 + $0x40] sm:$0xff]  ;;  %v2004_v26 = vld [vmem:[%s3280_s16 + $0x48] sm:$0xff] }
 0x18d   : > { %v1350_v34 = vpop.f32.mrf.mxu3 }
 0x18e   : > { %v1229_v36 = vmax.f32 %v1197_v33, 0.0  ;;  %v1351_v37 = vadd.f32 %v3234_v2, %v1350_v34  ;;  %v1997_v33 = vld [vmem:[%s3280_s16 + $0x10] sm:$0xff]  ;;  %v1998_v34 = vld [vmem:[%s3280_s16 + $0x18] sm:$0xff] }
 0x190   : > { %v1252_v39 = vpack.c.bf16 %v1229_v36, %v1228_v35  ;;  %v1417_v40 = vmax.f32 %v1351_v37, 0.0  ;;  %v2028_v36 = vpack.c.bf16 %v1998_v34, %v1997_v33  ;;  %v1673_v33 = vld [vmem:[%s3291_s19 + $0x40] sm:$0xff]  ;;  %v1674_v34 = vld [vmem:[%s3291_s19 + $0x48] sm:$0xff] }
 0x191   : > { %v1157_v41 = vpop.f32.mrf.mxu2 }
 0x192   : > { %v1449_v43 = vpack.c.bf16 %v1417_v40, %v1416_v38  ;;  %2656 = vmatmul.msk.bf16.gmra.mxu3 %vm1270_vm2, %v1252_v39  ;;  %v1070_v45 = vpop.f32.mrf.mxu1  ;;  %v1158_v47 = vadd.f32 %v1157_v41, %v1069_v42  ;;  %v1667_v38 = vld [vmem:[%s3291_s19 + $0x10] sm:$0xff]  ;;  %v1668_v39 = vld [vmem:[%s3291_s19 + $0x18] sm:$0xff] }
 0x193   : > { %v1071_v48 = vadd.f32 %v1070_v45, %v885_v44 }
 0x194   : > { %2671 = vmatmul.msk.bf16.gmra.mxu0 %vm1270_vm2, %v1449_v43  ;;  %v1198_v50 = vadd.f32 %v3143_v53, %v1158_v47  ;;  %v1698_v43 = vpack.c.bf16 %v1668_v39, %v1667_v38  ;;  %v1999_v47 = vld [vmem:[%s3280_s16 + $0x20] sm:$0xff] }
 0x195   : > { %v1353_v46 = vpop.f32.mrf.mxu3 }
 0x196   : > { %v1354_v55 = vadd.f32 %v3234_v2, %v1353_v46  ;;  %v1230_v58 = vmax.f32 %v1198_v50, 0.0 }
 0x198   : > { %v1418_v61 = vmax.f32 %v1354_v55, 0.0 }
 0x199   : > { %v1159_v49 = vpop.f32.mrf.mxu2 }
 0x19a   : > { %v1160_v51 = vadd.f32 %v1159_v49, %v1071_v48  ;;  %v1073_v52 = vpop.f32.mrf.mxu1  ;;  %v2000_v48 = vld [vmem:[%s3280_s16 + $0x28] sm:$0xff] }
 0x19b   : > { %v1074_v1 = vadd.f32 %v1073_v52, %v888_v56  ;;  %v2029_v50 = vpack.c.bf16 %v2000_v48, %v1999_v47 }
 0x19c   : > { %v1199_v54 = vadd.f32 %v3143_v53, %v1160_v51  ;;  %v3312_v51 = vld [vmem:[%s3654_s10] ss:$0 sm:$0xff] }
 0x19d   : > { %v1355_v57 = vpop.f32.mrf.mxu3 }
 0x19e   : > { %v1231_v59 = vmax.f32 %v1199_v54, 0.0  ;;  %v1356_v60 = vadd.f32 %v3234_v2, %v1355_v57  ;;  %v1669_v57 = vld [vmem:[%s3291_s19 + $0x20] sm:$0xff] }
 0x1a0   : > { %v1253_v62 = vpack.c.bf16 %v1231_v59, %v1230_v58  ;;  %v1419_v63 = vmax.f32 %v1356_v60, 0.0  ;;  %v1670_v58 = vld [vmem:[%s3291_s19 + $0x28] sm:$0xff] }
 0x1a1   : > { %v1162_v0 = vpop.f32.mrf.mxu2 }
 0x1a2   : > { %v1450_v3 = vpack.c.bf16 %v1419_v63, %v1418_v61  ;;  %2657 = vmatmul.msk.bf16.gmra.mxu3 %vm1270_vm2, %v1253_v62  ;;  %v1075_v4 = vpop.f32.mrf.mxu1  ;;  %v1163_v6 = vadd.f32 %v1162_v0, %v1074_v1  ;;  %v1699_v1 = vpack.c.bf16 %v1670_v58, %v1669_v57 }
 0x1a3   : > { %v1076_v8 = vadd.f32 %v1075_v4, %v890_v7  ;;  %v2002_v7 = vld [vmem:[%s3280_s16 + $0x38] sm:$0xff] }
 0x1a4   : > { %2672 = vmatmul.msk.bf16.gmra.mxu0 %vm1270_vm2, %v1450_v3  ;;  %v1200_v10 = vadd.f32 %v3143_v53, %v1163_v6  ;;  %v2001_v6 = vld [vmem:[%s3280_s16 + $0x30] sm:$0xff] }
 0x1a5   : > { %v1358_v5 = vpop.f32.mrf.mxu3 }
 0x1a6   : > { %v1359_v12 = vadd.f32 %v3234_v2, %v1358_v5  ;;  %v1232_v15 = vmax.f32 %v1200_v10, 0.0 }
 0x1a8   : > { %v1420_v18 = vmax.f32 %v1359_v12, 0.0 }
 0x1a9   : > { %v1164_v9 = vpop.f32.mrf.mxu2 }
 0x1aa   : > { %v1165_v11 = vadd.f32 %v1164_v9, %v1076_v8  ;;  %v2030_v9 = vpack.c.bf16 %v2002_v7, %v2001_v6 }
 0x1ac   : > { %v1201_v13 = vadd.f32 %v3143_v53, %v1165_v11  ;;  %v2027_v53 = vpack.c.bf16 %v1996_v22, %v1995_v21 }
 0x1ad   : > { %v1360_v14 = vpop.f32.mrf.mxu3 }
 0x1ae   : > { %v1233_v16 = vmax.f32 %v1201_v13, 0.0  ;;  %v1361_v17 = vadd.f32 %v3234_v2, %v1360_v14  ;;  %2715 = vmatmul.msk.bf16.vlgmr.msrb.gmra.mxu2 %vm1713_vm3, %v2027_v53  ;;  %v1671_v14 = vld [vmem:[%s3291_s19 + $0x30] sm:$0xff] }
 0x1b0   : > { %v1254_v19 = vpack.c.bf16 %v1233_v16, %v1232_v15  ;;  %v1421_v20 = vmax.f32 %v1361_v17, 0.0  ;;  %v1672_v15 = vld [vmem:[%s3291_s19 + $0x38] sm:$0xff] }
 0x1b1   : > { %v1700_v22 = vpack.c.bf16 %v1672_v15, %v1671_v14 }
 0x1b2   : > { %v1451_v23 = vpack.c.bf16 %v1421_v20, %v1420_v18  ;;  %2658 = vmatmul.msk.bf16.gmra.mxu3 %vm1270_vm2, %v1254_v19 }
 0x1b4   : > { %2673 = vmatmul.msk.bf16.gmra.mxu0 %vm1270_vm2, %v1451_v23 }
 0x1b5   : > { %v1363_v24 = vpop.f32.mrf.mxu3 }
 0x1b6   : > { %v1364_v27 = vadd.f32 %v3234_v2, %v1363_v24 }
 0x1b8   : > { %v1422_v31 = vmax.f32 %v1364_v27, 0.0 }
 0x1bd   : > { %v1365_v28 = vpop.f32.mrf.mxu3 }
 0x1be   : > { %v1366_v29 = vadd.f32 %v3234_v2, %v1365_v28  ;;  %2716 = vmatmul.msk.bf16.gmra.mxu2 %vm1713_vm3, %v2028_v36  ;;  %v2031_v28 = vpack.c.bf16 %v2004_v26, %v2003_v25 }
 0x1c0   : > { %v1423_v32 = vmax.f32 %v1366_v29, 0.0 }
 0x1c2   : > { %v1452_v35 = vpack.c.bf16 %v1423_v32, %v1422_v31  ;;  %2683 = vmatmul.msk.bf16.vlgmr.msrb.gmra.mxu3 %vm1713_vm3, %v1697_v30 }
 0x1c4   : > { %2674 = vmatmul.msk.bf16.gmra.mxu0 %vm1270_vm2, %v1452_v35 }
 0x1c5   : > { %v1368_v37 = vpop.f32.mrf.mxu3 }
 0x1c6   : > { %v1369_v40 = vadd.f32 %v3234_v2, %v1368_v37 }
 0x1c8   : > { %v1424_v44 = vmax.f32 %v1369_v40, 0.0 }
 0x1cd   : > { %v1370_v41 = vpop.f32.mrf.mxu3 }
 0x1ce   : > { %v1371_v42 = vadd.f32 %v3234_v2, %v1370_v41  ;;  %2717 = vmatmul.msk.bf16.gmra.mxu2 %vm1713_vm3, %v2029_v50  ;;  %v1701_v41 = vpack.c.bf16 %v1674_v34, %v1673_v33 }
 0x1d0   : > { %v1425_v45 = vmax.f32 %v1371_v42, 0.0 }
 0x1d1   : > { %v1533_v46 = vpop.f32.mrf.mxu0 }
 0x1d2   : > { %v1453_v49 = vpack.c.bf16 %v1425_v45, %v1424_v44  ;;  %2684 = vmatmul.msk.bf16.gmra.mxu3 %vm1713_vm3, %v1698_v43  ;;  %v1534_v55 = vadd.f32 %v3312_v51, %v1533_v46  ;;  %v2005_v45 = vld [vmem:[%s3280_s16 + $0x50] sm:$0xff]  ;;  %v2006_v46 = vld [vmem:[%s3280_s16 + $0x58] sm:$0xff] }
 0x1d3   : > { %v2032_v48 = vpack.c.bf16 %v2006_v46, %v2005_v45 }
 0x1d4   : > { %2675 = vmatmul.msk.bf16.gmra.mxu0 %vm1270_vm2, %v1453_v49  ;;  %v1613_v59 = vmax.f32 %v1534_v55, 0.0 }
 0x1d5   : > { %v1373_v52 = vpop.f32.mrf.mxu3 }
 0x1d6   : > { %v1374_v60 = vadd.f32 %v3234_v2, %v1373_v52 }
 0x1d8   : > { %v1426_v3 = vmax.f32 %v1374_v60, 0.0 }
 0x1d9   : > { %v1535_v54 = vpop.f32.mrf.mxu0 }
 0x1da   : > { %v1536_v56 = vadd.f32 %v3312_v51, %v1535_v54  ;;  %v1675_v54 = vld [vmem:[%s3291_s19 + $0x50] sm:$0xff] }
 0x1dc   : > { %v1614_v61 = vmax.f32 %v1536_v56, 0.0  ;;  %v1676_v56 = vld [vmem:[%s3291_s19 + $0x58] sm:$0xff] }
 0x1dd   : > { %v1375_v62 = vpop.f32.mrf.mxu3 }
 0x1de   : > { %v1649_v63 = vpack.c.bf16 %v1614_v61, %v1613_v59  ;;  %v1376_v0 = vadd.f32 %v3234_v2, %v1375_v62  ;;  %2718 = vmatmul.msk.bf16.gmra.mxu2 %vm1713_vm3, %v2030_v9 }
 0x1e0   : > { %v1427_v4 = vmax.f32 %v1376_v0, 0.0  ;;  %2699 = vmatmul.msk.bf16.vlgmr.msrb.gmra.mxu1 %vm1713_vm3, %v1649_v63  ;;  %v1702_v63 = vpack.c.bf16 %v1676_v56, %v1675_v54  ;;  %v1682_v54 = vld [vmem:[%s3291_s19 + $0x88] sm:$0xff] }
 0x1e1   : > { %v1538_v5 = vpop.f32.mrf.mxu0 }
 0x1e2   : > { %v1454_v8 = vpack.c.bf16 %v1427_v4, %v1426_v3  ;;  %2685 = vmatmul.msk.bf16.gmra.mxu3 %vm1713_vm3, %v1699_v1  ;;  %v1539_v11 = vadd.f32 %v3312_v51, %v1538_v5  ;;  %v2007_v4 = vld [vmem:[%s3280_s16 + $0x60] sm:$0xff]  ;;  %v2008_v5 = vld [vmem:[%s3280_s16 + $0x68] sm:$0xff] }
 0x1e3   : > { %v2033_v7 = vpack.c.bf16 %v2008_v5, %v2007_v4  ;;  %v2013_v4 = vld [vmem:[%s3280_s16 + $0x90] sm:$0xff]  ;;  %v2014_v5 = vld [vmem:[%s3280_s16 + $0x98] sm:$0xff] }
 0x1e4   : > { %2676 = vmatmul.msk.bf16.gmra.mxu0 %vm1270_vm2, %v1454_v8  ;;  %v1615_v16 = vmax.f32 %v1539_v11, 0.0 }
 0x1e5   : > { %v1378_v10 = vpop.f32.mrf.mxu3 }
 0x1e6   : > { %v1379_v17 = vadd.f32 %v3234_v2, %v1378_v10 }
 0x1e8   : > { %v1428_v23 = vmax.f32 %v1379_v17, 0.0 }
 0x1e9   : > { %v1540_v12 = vpop.f32.mrf.mxu0 }
 0x1ea   : > { %v1541_v13 = vadd.f32 %v3312_v51, %v1540_v12  ;;  %v1677_v12 = vld [vmem:[%s3291_s19 + $0x60] sm:$0xff] }
 0x1ec   : > { %v1616_v18 = vmax.f32 %v1541_v13, 0.0  ;;  %v1678_v13 = vld [vmem:[%s3291_s19 + $0x68] sm:$0xff] }
 0x1ed   : > { %v1380_v19 = vpop.f32.mrf.mxu3 }
 0x1ee   : > { %v1650_v20 = vpack.c.bf16 %v1616_v18, %v1615_v16  ;;  %v1381_v21 = vadd.f32 %v3234_v2, %v1380_v19  ;;  %2719 = vmatmul.msk.bf16.gmra.mxu2 %vm1713_vm3, %v2031_v28 }
 0x1f0   : > { %v1429_v53 = vmax.f32 %v1381_v21, 0.0  ;;  %2700 = vmatmul.msk.bf16.gmra.mxu1 %vm1713_vm3, %v1650_v20  ;;  %v1703_v20 = vpack.c.bf16 %v1678_v13, %v1677_v12  ;;  %v1683_v12 = vld [vmem:[%s3291_s19 + $0x90] sm:$0xff]  ;;  %v1684_v13 = vld [vmem:[%s3291_s19 + $0x98] sm:$0xff] }
 0x1f1   : > { %v1543_v24 = vpop.f32.mrf.mxu0 }
 0x1f2   : > { %v1455_v27 = vpack.c.bf16 %v1429_v53, %v1428_v23  ;;  %2686 = vmatmul.msk.bf16.gmra.mxu3 %vm1713_vm3, %v1700_v22  ;;  %v1544_v30 = vadd.f32 %v3312_v51, %v1543_v24  ;;  %v2009_v53 = vld [vmem:[%s3280_s16 + $0x70] sm:$0xff]  ;;  %v2010_v24 = vld [vmem:[%s3280_s16 + $0x78] sm:$0xff] }
 0x1f3   : > { %v2034_v26 = vpack.c.bf16 %v2010_v24, %v2009_v53 }
 0x1f4   : > { %2677 = vmatmul.msk.bf16.gmra.mxu0 %vm1270_vm2, %v1455_v27  ;;  %v1617_v35 = vmax.f32 %v1544_v30, 0.0 }
 0x1f5   : > { %v1383_v29 = vpop.f32.mrf.mxu3 }
 0x1f6   : > { %v1384_v36 = vadd.f32 %v3234_v2, %v1383_v29 }
 0x1f8   : > { %v1430_v42 = vmax.f32 %v1384_v36, 0.0 }
 0x1f9   : > { %v1545_v31 = vpop.f32.mrf.mxu0 }
 0x1fa   : > { %v1546_v32 = vadd.f32 %v3312_v51, %v1545_v31  ;;  %v1679_v31 = vld [vmem:[%s3291_s19 + $0x70] sm:$0xff] }
 0x1fc   : > { %v1618_v37 = vmax.f32 %v1546_v32, 0.0  ;;  %v1680_v32 = vld [vmem:[%s3291_s19 + $0x78] sm:$0xff] }
 0x1fd   : > { %v1385_v38 = vpop.f32.mrf.mxu3 }
 0x1fe   : > { %v1651_v39 = vpack.c.bf16 %v1618_v37, %v1617_v35  ;;  %v1386_v40 = vadd.f32 %v3234_v2, %v1385_v38  ;;  %2720 = vmatmul.msk.bf16.gmra.mxu2 %vm1713_vm3, %v2032_v48 }
 0x200   : > { %v1431_v43 = vmax.f32 %v1386_v40, 0.0  ;;  %2701 = vmatmul.msk.bf16.gmra.mxu1 %vm1713_vm3, %v1651_v39  ;;  %v1704_v39 = vpack.c.bf16 %v1680_v32, %v1679_v31 }
 0x201   : > { %v1548_v44 = vpop.f32.mrf.mxu0 }
 0x202   : > { %v1456_v47 = vpack.c.bf16 %v1431_v43, %v1430_v42  ;;  %2687 = vmatmul.msk.bf16.gmra.mxu3 %vm1713_vm3, %v1701_v41  ;;  %v1549_v50 = vadd.f32 %v3312_v51, %v1548_v44  ;;  %v2011_v43 = vld [vmem:[%s3280_s16 + $0x80] sm:$0xff]  ;;  %v2012_v44 = vld [vmem:[%s3280_s16 + $0x88] sm:$0xff] }
 0x203   : > { %v2035_v46 = vpack.c.bf16 %v2012_v44, %v2011_v43 }
 0x204   : > { %2678 = vmatmul.msk.bf16.gmra.mxu0 %vm1270_vm2, %v1456_v47  ;;  %v1619_v57 = vmax.f32 %v1549_v50, 0.0 }
 0x205   : > { %v1388_v49 = vpop.f32.mrf.mxu3 }
 0x206   : > { %v1389_v58 = vadd.f32 %v3234_v2, %v1388_v49 }
 0x208   : > { %v1432_v0 = vmax.f32 %v1389_v58, 0.0 }
 0x209   : > { %v1550_v52 = vpop.f32.mrf.mxu0 }
 0x20a   : > { %v1551_v55 = vadd.f32 %v3312_v51, %v1550_v52 }
 0x20c   : > { %v1620_v59 = vmax.f32 %v1551_v55, 0.0  ;;  %v1681_v55 = vld [vmem:[%s3291_s19 + $0x80] sm:$0xff] }
 0x20d   : > { %v1390_v60 = vpop.f32.mrf.mxu3 }
 0x20e   : > { %v1652_v61 = vpack.c.bf16 %v1620_v59, %v1619_v57  ;;  %v1391_v62 = vadd.f32 %v3234_v2, %v1390_v60  ;;  %2721 = vmatmul.msk.bf16.gmra.mxu2 %vm1713_vm3, %v2033_v7  ;;  %v2036_v7 = vpack.c.bf16 %v2014_v5, %v2013_v4 }
 0x210   : > { %v1433_v1 = vmax.f32 %v1391_v62, 0.0  ;;  %2702 = vmatmul.msk.bf16.gmra.mxu1 %vm1713_vm3, %v1652_v61  ;;  %v1705_v62 = vpack.c.bf16 %v1682_v54, %v1681_v55 }
 0x211   : > { %v1553_v3 = vpop.f32.mrf.mxu0 }
 0x212   : > { %v1457_v6 = vpack.c.bf16 %v1433_v1, %v1432_v0  ;;  %2688 = vmatmul.msk.bf16.gmra.mxu3 %vm1713_vm3, %v1702_v63  ;;  %v1554_v9 = vadd.f32 %v3312_v51, %v1553_v3 }
 0x214   : > { %2679 = vmatmul.msk.bf16.gmra.mxu0 %vm1270_vm2, %v1457_v6  ;;  %v1621_v14 = vmax.f32 %v1554_v9, 0.0 }
 0x215   : > { %v1393_v8 = vpop.f32.mrf.mxu3 }
 0x216   : > { %v1394_v15 = vadd.f32 %v3234_v2, %v1393_v8 }
 0x218   : > { %v1434_v21 = vmax.f32 %v1394_v15, 0.0 }
 0x219   : > { %v1555_v10 = vpop.f32.mrf.mxu0 }
 0x21a   : > { %v1556_v11 = vadd.f32 %v3312_v51, %v1555_v10 }
 0x21c   : > { %v1622_v16 = vmax.f32 %v1556_v11, 0.0 }
 0x21d   : > { %v1395_v17 = vpop.f32.mrf.mxu3 }
 0x21e   : > { %v1653_v18 = vpack.c.bf16 %v1622_v16, %v1621_v14  ;;  %v1396_v19 = vadd.f32 %v3234_v2, %v1395_v17  ;;  %2722 = vmatmul.msk.bf16.gmra.mxu2 %vm1713_vm3, %v2034_v26 }
 0x220   : > { %v1435_v22 = vmax.f32 %v1396_v19, 0.0  ;;  %2703 = vmatmul.msk.bf16.gmra.mxu1 %vm1713_vm3, %v1653_v18  ;;  %v1706_v18 = vpack.c.bf16 %v1684_v13, %v1683_v12  ;;  %v2020_v12 = vld [vmem:[%s3280_s16 + $0xc8] sm:$0xff] }
 0x221   : > { %v1558_v23 = vpop.f32.mrf.mxu0 }
 0x222   : > { %v1458_v25 = vpack.c.bf16 %v1435_v22, %v1434_v21  ;;  %2689 = vmatmul.msk.bf16.gmra.mxu3 %vm1713_vm3, %v1703_v20  ;;  %v1559_v28 = vadd.f32 %v3312_v51, %v1558_v23  ;;  %v2015_v21 = vld [vmem:[%s3280_s16 + $0xa0] sm:$0xff]  ;;  %v2016_v22 = vld [vmem:[%s3280_s16 + $0xa8] sm:$0xff] }
 0x223   : > { %v2037_v23 = vpack.c.bf16 %v2016_v22, %v2015_v21 }
 0x224   : > { %2680 = vmatmul.msk.bf16.gmra.mxu0 %vm1270_vm2, %v1458_v25  ;;  %v1623_v33 = vmax.f32 %v1559_v28, 0.0  ;;  %v1685_v28 = vld [vmem:[%s3291_s19 + $0xa0] sm:$0xff] }
 0x225   : > { %v1398_v27 = vpop.f32.mrf.mxu3 }
 0x226   : > { %v1399_v34 = vadd.f32 %v3234_v2, %v1398_v27 }
 0x228   : > { %v1436_v40 = vmax.f32 %v1399_v34, 0.0 }
 0x229   : > { %v1560_v29 = vpop.f32.mrf.mxu0 }
 0x22a   : > { %v1561_v30 = vadd.f32 %v3312_v51, %v1560_v29  ;;  %v1686_v29 = vld [vmem:[%s3291_s19 + $0xa8] sm:$0xff] }
 0x22c   : > { %v1624_v35 = vmax.f32 %v1561_v30, 0.0 }
 0x22d   : > { %v1400_v36 = vpop.f32.mrf.mxu3 }
 0x22e   : > { %v1654_v37 = vpack.c.bf16 %v1624_v35, %v1623_v33  ;;  %v1401_v38 = vadd.f32 %v3234_v2, %v1400_v36  ;;  %2723 = vmatmul.msk.bf16.gmra.mxu2 %vm1713_vm3, %v2035_v46  ;;  %v3421_v36 = vld [vmem:[#allocation2] ss:$0 sm:$0xff] }
 0x230   : > { %v1437_v41 = vmax.f32 %v1401_v38, 0.0  ;;  %2704 = vmatmul.msk.bf16.gmra.mxu1 %vm1713_vm3, %v1654_v37  ;;  %v1707_v37 = vpack.c.bf16 %v1686_v29, %v1685_v28  ;;  %v1689_v29 = vld [vmem:[%s3291_s19 + $0xc0] sm:$0xff] }
 0x231   : > { %v1563_v42 = vpop.f32.mrf.mxu0  ;;  %v2103_v48 = vpop.f32.mrf.mxu2 }
 0x232   : > { %v1459_v45 = vpack.c.bf16 %v1437_v41, %v1436_v40  ;;  %2690 = vmatmul.msk.bf16.gmra.mxu3 %vm1713_vm3, %v1704_v39  ;;  %v1564_v49 = vadd.f32 %v3312_v51, %v1563_v42  ;;  %v2017_v41 = vld [vmem:[%s3280_s16 + $0xb0] sm:$0xff]  ;;  %v2018_v42 = vld [vmem:[%s3280_s16 + $0xb8] sm:$0xff] }
 0x233   : > { %v2038_v44 = vpack.c.bf16 %v2018_v42, %v2017_v41 }
 0x234   : > { %2681 = vmatmul.msk.bf16.gmra.mxu0 %vm1270_vm2, %v1459_v45  ;;  %v1625_v56 = vmax.f32 %v1564_v49, 0.0 }
 0x235   : > { %v1403_v47 = vpop.f32.mrf.mxu3 }
 0x236   : > { %v1404_v57 = vadd.f32 %v3234_v2, %v1403_v47 }
 0x238   : > { %v1438_v0 = vmax.f32 %v1404_v57, 0.0 }
 0x239   : > { %v1565_v50 = vpop.f32.mrf.mxu0  ;;  %v3394_v63 = vpop.f32.mrf.mxu2 }
 0x23a   : > { %v1566_v52 = vadd.f32 %v3312_v51, %v1565_v50 }
 0x23c   : > { %v1626_v58 = vmax.f32 %v1566_v52, 0.0 }
 0x23d   : > { %v1405_v59 = vpop.f32.mrf.mxu3 }
 0x23e   : > { %v1655_v60 = vpack.c.bf16 %v1626_v58, %v1625_v56  ;;  %v1406_v61 = vadd.f32 %v3234_v2, %v1405_v59  ;;  %2724 = vmatmul.msk.bf16.gmra.mxu2 %vm1713_vm3, %v2036_v7  ;;  %v1687_v58 = vld [vmem:[%s3291_s19 + $0xb0] sm:$0xff]  ;;  %v1688_v59 = vld [vmem:[%s3291_s19 + $0xb8] sm:$0xff] }
 0x240   : > { %v1439_v1 = vmax.f32 %v1406_v61, 0.0  ;;  %2705 = vmatmul.msk.bf16.gmra.mxu1 %vm1713_vm3, %v1655_v60 }
 0x241   : > { %v1568_v3 = vpop.f32.mrf.mxu0  ;;  %v3402_v8 = vpop.f32.mrf.mxu2 }
 0x242   : > { %v1460_v6 = vpack.c.bf16 %v1439_v1, %v1438_v0  ;;  %2691 = vmatmul.msk.bf16.gmra.mxu3 %vm1713_vm3, %v1705_v62  ;;  %v1569_v9 = vadd.f32 %v3312_v51, %v1568_v3 }
 0x244   : > { %2682 = vmatmul.msk.bf16.gmra.mxu0 %vm1270_vm2, %v1460_v6  ;;  %v1627_v14 = vmax.f32 %v1569_v9, 0.0 }
 0x245   : > { %v1775_v2 = vpop.f32.mrf.mxu3 }
 0x249   : > { %v1570_v10 = vpop.f32.mrf.mxu0  ;;  %v3408_v19 = vpop.f32.mrf.mxu2 }
 0x24a   : > { %v1571_v11 = vadd.f32 %v3312_v51, %v1570_v10 }
 0x24c   : > { %v1628_v15 = vmax.f32 %v1571_v11, 0.0  ;;  %v2019_v11 = vld [vmem:[%s3280_s16 + $0xc0] sm:$0xff] }
 0x24d   : > { %v1777_v16 = vpop.f32.mrf.mxu3 }
 0x24e   : > { %v1656_v17 = vpack.c.bf16 %v1628_v15, %v1627_v14  ;;  %2725 = vmatmul.msk.bf16.gmra.mxu2 %vm1713_vm3, %v2037_v23  ;;  %v2039_v14 = vpack.c.bf16 %v2020_v12, %v2019_v11 }
 0x250   : > { %2706 = vmatmul.msk.bf16.gmra.mxu1 %vm1713_vm3, %v1656_v17 }
 0x251   : > { %v1573_v20 = vpop.f32.mrf.mxu0  ;;  %v3415_v24 = vpop.f32.mrf.mxu2 }
 0x252   : > { %2692 = vmatmul.msk.bf16.gmra.mxu3 %vm1713_vm3, %v1706_v18  ;;  %v1574_v25 = vadd.f32 %v3312_v51, %v1573_v20 }
 0x254   : > { %v1629_v30 = vmax.f32 %v1574_v25, 0.0 }
 0x255   : > { %v1780_v53 = vpop.f32.mrf.mxu3 }
 0x259   : > { %v1575_v26 = vpop.f32.mrf.mxu0  ;;  %v3423_v38 = vpop.f32.mrf.mxu2 }
 0x25a   : > { %v1576_v27 = vadd.f32 %v3312_v51, %v1575_v26 }
 0x25c   : > { %v1630_v31 = vmax.f32 %v1576_v27, 0.0 }
 0x25d   : > { %v1915_v32 = vpop.f32.mrf.mxu1  ;;  %v1782_v33 = vpop.f32.mrf.mxu3 }
 0x25e   : > { %v1657_v34 = vpack.c.bf16 %v1630_v31, %v1629_v30  ;;  %v1916_v35 = vadd.f32 %v1915_v32, %v1775_v2  ;;  %2726 = vmatmul.msk.bf16.gmra.mxu2 %vm1713_vm3, %v2038_v44  ;;  %v1690_v30 = vld [vmem:[%s3291_s19 + $0xc8] sm:$0xff] }
 0x25f   : > { %v1709_v41 = vpack.c.bf16 %v1690_v30, %v1689_v29 }
 0x260   : > { %v2183_v39 = vadd.f32 %v2103_v48, %v1916_v35  ;;  %2707 = vmatmul.msk.bf16.gmra.mxu1 %vm1713_vm3, %v1657_v34 }
 0x261   : > { %v1578_v40 = vpop.f32.mrf.mxu0  ;;  %v3433_v50 = vpop.f32.mrf.mxu2 }
 0x262   : > { %v2218_v43 = vadd.f32 %v3421_v36, %v2183_v39  ;;  %2693 = vmatmul.msk.bf16.gmra.mxu3 %vm1713_vm3, %v1707_v37  ;;  %v1579_v52 = vadd.f32 %v3312_v51, %v1578_v40 }
 0x264   : > { %v2250_v45 = vsub.f32 0.0, %v2218_v43  ;;  %v1631_v60 = vmax.f32 %v1579_v52, 0.0 }
 0x265   : > { %v1917_v46 = vpop.f32.mrf.mxu1  ;;  %v3431_v47 = vpop.f32.mrf.mxu3 }
 0x266   : > { %v2282_v49 = vmul.f32 1.442695, %v2250_v45  ;;  %v1918_v48 = vadd.f32 %v1917_v46, %v1777_v16 }
 0x268   : > { %2767 = vpow2.f32 %v2282_v49  ;;  %v2184_v55 = vadd.f32 %v3394_v63, %v1918_v48  ;;  %v1708_v63 = vpack.c.bf16 %v1688_v59, %v1687_v58  ;;  %v2021_v49 = vld [vmem:[%s3280_s16 + $0xd0] sm:$0xff]  ;;  %v2022_v48 = vld [vmem:[%s3280_s16 + $0xd8] sm:$0xff] }
 0x269   : > { %v1580_v54 = vpop.f32.mrf.mxu0  ;;  %v3443_v2 = vpop.f32.mrf.mxu2 }
 0x26a   : > { %v2219_v56 = vadd.f32 %v3421_v36, %v2184_v55  ;;  %v1581_v57 = vadd.f32 %v3312_v51, %v1580_v54 }
 0x26c   : > { %v2251_v61 = vsub.f32 0.0, %v2219_v56  ;;  %v1632_v62 = vmax.f32 %v1581_v57, 0.0 }
 0x26d   : > { %v1920_v0 = vpop.f32.mrf.mxu1  ;;  %v3441_v1 = vpop.f32.mrf.mxu3 }
 0x26e   : > { %v2768_v3 = vpop.eup %2767  ;;  %v2284_v4 = vmul.f32 1.442695, %v2251_v61  ;;  %v1658_v5 = vpack.c.bf16 %v1632_v62, %v1631_v60  ;;  %v1921_v6 = vadd.f32 %v1920_v0, %v1780_v53  ;;  %2727 = vmatmul.msk.bf16.gmra.mxu2 %vm1713_vm3, %v2039_v14 }
 0x26f   : > { %v2346_v7 = vadd.f32 1.0, %v2768_v3 }
 0x270   : > { %2769 = vpow2.f32 %v2284_v4  ;;  %v2185_v9 = vadd.f32 %v3402_v8, %v1921_v6  ;;  %2708 = vmatmul.msk.bf16.gmra.mxu1 %vm1713_vm3, %v1658_v5  ;;  %v1691_v6 = vld [vmem:[%s3291_s19 + $0xd0] sm:$0xff] }
 0x271   : > { %2771 = vrcp.f32 %v2346_v7  ;;  %v1583_v10 = vpop.f32.mrf.mxu0  ;;  %v3460_v23 = vpop.f32.mrf.mxu2 }
 0x272   : > { %v2220_v13 = vadd.f32 %v3421_v36, %v2185_v9  ;;  %2694 = vmatmul.msk.bf16.gmra.mxu3 %vm1713_vm3, %v1708_v63  ;;  %v1584_v53 = vadd.f32 %v3312_v51, %v1583_v10 }
 0x274   : > { %v2252_v15 = vsub.f32 0.0, %v2220_v13  ;;  %v1633_v31 = vmax.f32 %v1584_v53, 0.0  ;;  %v2024_v53 = vld [vmem:[%s3280_s16 + $0xe8] sm:$0xff] }
 0x275   : > { %v1922_v8 = vpop.f32.mrf.mxu1  ;;  %v3458_v16 = vpop.f32.mrf.mxu3 }
 0x276   : > { %v2770_v17 = vpop.eup %2769  ;;  %v2286_v18 = vmul.f32 1.442695, %v2252_v15  ;;  %v1923_v20 = vadd.f32 %v1922_v8, %v1782_v33 }
 0x277   : > { %v2772_v21 = vpop.eup %2771  ;;  %v2347_v22 = vadd.f32 1.0, %v2770_v17 }
 0x278   : > { %2411 = vst.msk [vmem:[%s3456_s27] sm:$0xff] %vm2410_vm4, %v2772_v21  ;;  %2773 = vpow2.f32 %v2286_v18  ;;  %v2186_v25 = vadd.f32 %v3408_v19, %v1923_v20 }
 0x279   : > { %2775 = vrcp.f32 %v2347_v22  ;;  %v1585_v26 = vpop.f32.mrf.mxu0  ;;  %v3473_v44 = vpop.f32.mrf.mxu2  ;;  %v2023_v22 = vld [vmem:[%s3280_s16 + $0xe0] sm:$0xff] }
 0x27a   : > { %v2221_v27 = vadd.f32 %v3421_v36, %v2186_v25  ;;  %v1586_v28 = vadd.f32 %v3312_v51, %v1585_v26 }
 0x27c   : > { %v2253_v32 = vsub.f32 0.0, %v2221_v27  ;;  %v1634_v33 = vmax.f32 %v1586_v28, 0.0 }
 0x27d   : > { %v1925_v34 = vpop.f32.mrf.mxu1  ;;  %v3470_v35 = vpop.f32.mrf.mxu3 }
 0x27e   : > { %v2774_v37 = vpop.eup %2773  ;;  %v2288_v39 = vmul.f32 1.442695, %v2253_v32  ;;  %v1659_v19 = vpack.c.bf16 %v1634_v33, %v1633_v31  ;;  %v1926_v40 = vadd.f32 %v1925_v34, %v3431_v47  ;;  %v2040_v47 = vpack.c.bf16 %v2022_v48, %v2021_v49 }
 0x27f   : > { %v2776_v42 = vpop.eup %2775  ;;  %v2348_v43 = vadd.f32 1.0, %v2774_v37 }
 0x280   : > { %2412 = vst.msk [vmem:[%s3456_s27 + $0x8] sm:$0xff] %vm2410_vm4, %v2776_v42  ;;  %2777 = vpow2.f32 %v2288_v39  ;;  %v2187_v45 = vadd.f32 %v3415_v24, %v1926_v40  ;;  %2709 = vmatmul.msk.bf16.gmra.mxu1 %vm1713_vm3, %v1659_v19  ;;  %2728 = vmatmul.msk.bf16.gmra.mxu2 %vm1713_vm3, %v2040_v47 }
 0x281   : > { %2779 = vrcp.f32 %v2348_v43  ;;  %v1588_v46 = vpop.f32.mrf.mxu0  ;;  %v3487_v61 = vpop.f32.mrf.mxu2 }
 0x282   : > { %v2222_v52 = vadd.f32 %v3421_v36, %v2187_v45  ;;  %2695 = vmatmul.msk.bf16.gmra.mxu3 %vm1713_vm3, %v1709_v41  ;;  %v1589_v62 = vadd.f32 %v3312_v51, %v1588_v46  ;;  %v1693_v41 = vld [vmem:[%s3291_s19 + $0xe0] sm:$0xff] }
 0x284   : > { %v2254_v55 = vsub.f32 0.0, %v2222_v52  ;;  %v1635_v63 = vmax.f32 %v1589_v62, 0.0 }
 0x285   : > { %v1927_v54 = vpop.f32.mrf.mxu1  ;;  %v3484_v56 = vpop.f32.mrf.mxu3 }
 0x286   : > { %v2778_v24 = vpop.eup %2777  ;;  %v2290_v57 = vmul.f32 1.442695, %v2254_v55  ;;  %v1928_v58 = vadd.f32 %v1927_v54, %v3441_v1  ;;  %v1692_v1 = vld [vmem:[%s3291_s19 + $0xd8] sm:$0xff] }
 0x287   : > { %v2780_v59 = vpop.eup %2779  ;;  %v2349_v60 = vadd.f32 1.0, %v2778_v24  ;;  %v1710_v15 = vpack.c.bf16 %v1692_v1, %v1691_v6 }
 0x288   : > { %2413 = vst.msk [vmem:[%s3456_s27 + $0x10] sm:$0xff] %vm2410_vm4, %v2780_v59  ;;  %2781 = vpow2.f32 %v2290_v57  ;;  %v2188_v0 = vadd.f32 %v3423_v38, %v1928_v58  ;;  %v2025_v59 = vld [vmem:[%s3280_s16 + $0xf0] sm:$0xff] }
 0x289   : > { %2783 = vrcp.f32 %v2349_v60  ;;  %v1590_v3 = vpop.f32.mrf.mxu0  ;;  %v3500_v18 = vpop.f32.mrf.mxu2  ;;  %v2026_v60 = vld [vmem:[%s3280_s16 + $0xf8] sm:$0xff] }
 0x28a   : > { %v2223_v4 = vadd.f32 %v3421_v36, %v2188_v0  ;;  %v1591_v5 = vadd.f32 %v3312_v51, %v1590_v3  ;;  %v2042_v0 = vpack.c.bf16 %v2026_v60, %v2025_v59 }
 0x28c   : > { %v2255_v7 = vsub.f32 0.0, %v2223_v4  ;;  %v1636_v9 = vmax.f32 %v1591_v5, 0.0 }
 0x28d   : > { %v1930_v10 = vpop.f32.mrf.mxu1  ;;  %v3497_v11 = vpop.f32.mrf.mxu3 }
 0x28e   : > { %v2782_v12 = vpop.eup %2781  ;;  %v2292_v13 = vmul.f32 1.442695, %v2255_v7  ;;  %v1660_v38 = vpack.c.bf16 %v1636_v9, %v1635_v63  ;;  %v1931_v14 = vadd.f32 %v1930_v10, %v3458_v16  ;;  %v2041_v16 = vpack.c.bf16 %v2024_v53, %v2023_v22 }
 0x28f   : > { %v2784_v8 = vpop.eup %2783  ;;  %v2350_v17 = vadd.f32 1.0, %v2782_v12 }
 0x290   : > { %2414 = vst.msk [vmem:[%s3456_s27 + $0x18] sm:$0xff] %vm2410_vm4, %v2784_v8  ;;  %2785 = vpow2.f32 %v2292_v13  ;;  %v2189_v20 = vadd.f32 %v3433_v50, %v1931_v14  ;;  %2710 = vmatmul.msk.bf16.gmra.mxu1 %vm1713_vm3, %v1660_v38  ;;  %2729 = vmatmul.msk.bf16.gmra.mxu2 %vm1713_vm3, %v2041_v16  ;;  %v1695_v14 = vld [vmem:[%s3291_s19 + $0xf0] sm:$0xff] }
 0x291   : > { %2787 = vrcp.f32 %v2350_v17  ;;  %v1593_v21 = vpop.f32.mrf.mxu0  ;;  %v3518_v37 = vpop.f32.mrf.mxu2 }
 0x292   : > { %v2224_v25 = vadd.f32 %v3421_v36, %v2189_v20  ;;  %2696 = vmatmul.msk.bf16.gmra.mxu3 %vm1713_vm3, %v1710_v15  ;;  %v1594_v33 = vadd.f32 %v3312_v51, %v1593_v21  ;;  %v1696_v15 = vld [vmem:[%s3291_s19 + $0xf8] sm:$0xff] }
 0x294   : > { %v2256_v26 = vsub.f32 0.0, %v2224_v25  ;;  %v1637_v42 = vmax.f32 %v1594_v33, 0.0 }
 0x295   : > { %v1932_v27 = vpop.f32.mrf.mxu1  ;;  %v3511_v28 = vpop.f32.mrf.mxu3 }
 0x296   : > { %v2786_v50 = vpop.eup %2785  ;;  %v2294_v29 = vmul.f32 1.442695, %v2256_v26  ;;  %v1933_v30 = vadd.f32 %v1932_v27, %v3470_v35  ;;  %v1694_v35 = vld [vmem:[%s3291_s19 + $0xe8] sm:$0xff]  ;;  %v1712_v26 = vpack.c.bf16 %v1696_v15, %v1695_v14 }
 0x297   : > { %v2788_v31 = vpop.eup %2787  ;;  %v2351_v32 = vadd.f32 1.0, %v2786_v50  ;;  %v1711_v55 = vpack.c.bf16 %v1694_v35, %v1693_v41 }
 0x298   : > { %2415 = vst.msk [vmem:[%s3456_s27 + $0x20] sm:$0xff] %vm2410_vm4, %v2788_v31  ;;  %2789 = vpow2.f32 %v2294_v29  ;;  %v2190_v34 = vadd.f32 %v3443_v2, %v1933_v30 }
 0x299   : > { %2791 = vrcp.f32 %v2351_v32  ;;  %v1595_v39 = vpop.f32.mrf.mxu0 }
 0x29a   : > { %v2225_v19 = vadd.f32 %v3421_v36, %v2190_v34  ;;  %v1596_v40 = vadd.f32 %v3312_v51, %v1595_v39 }
 0x29c   : > { %v2257_v43 = vsub.f32 0.0, %v2225_v19  ;;  %v1638_v45 = vmax.f32 %v1596_v40, 0.0 }
 0x29d   : > { %v1935_v46 = vpop.f32.mrf.mxu1  ;;  %v3524_v49 = vpop.f32.mrf.mxu3 }
 0x29e   : > { %v2790_v2 = vpop.eup %2789  ;;  %v2296_v48 = vmul.f32 1.442695, %v2257_v43  ;;  %v1661_v52 = vpack.c.bf16 %v1638_v45, %v1637_v42  ;;  %v1936_v47 = vadd.f32 %v1935_v46, %v3484_v56  ;;  %v3535_v56 = vpop.f32.mrf.mxu2 }
 0x29f   : > { %v2792_v54 = vpop.eup %2791  ;;  %v2352_v24 = vadd.f32 1.0, %v2790_v2 }
 0x2a0   : > { %2416 = vst.msk [vmem:[%s3456_s27 + $0x28] sm:$0xff] %vm2410_vm4, %v2792_v54  ;;  %2793 = vpow2.f32 %v2296_v48  ;;  %v2191_v57 = vadd.f32 %v3460_v23, %v1936_v47  ;;  %2711 = vmatmul.msk.bf16.gmra.mxu1 %vm1713_vm3, %v1661_v52  ;;  %2730 = vmatmul.msk.bf16.gmra.mxu2 %vm1713_vm3, %v2042_v0 }
 0x2a1   : > { %2795 = vrcp.f32 %v2352_v24  ;;  %v1598_v58 = vpop.f32.mrf.mxu0 }
 0x2a2   : > { %v2226_v62 = vadd.f32 %v3421_v36, %v2191_v57  ;;  %2697 = vmatmul.msk.bf16.gmra.mxu3 %vm1713_vm3, %v1711_v55  ;;  %v1599_v9 = vadd.f32 %v3312_v51, %v1598_v58 }
 0x2a4   : > { %v2258_v3 = vsub.f32 0.0, %v2226_v62  ;;  %v1639_v8 = vmax.f32 %v1599_v9, 0.0 }
 0x2a5   : > { %v1937_v4 = vpop.f32.mrf.mxu1  ;;  %v1805_v23 = vpop.f32.mrf.mxu3 }
 0x2a6   : > { %v2794_v5 = vpop.eup %2793  ;;  %v2298_v6 = vmul.f32 1.442695, %v2258_v3  ;;  %v1938_v1 = vadd.f32 %v1937_v4, %v3497_v11  ;;  %v3547_v20 = vpop.f32.mrf.mxu2 }
 0x2a7   : > { %v2796_v63 = vpop.eup %2795  ;;  %v2353_v7 = vadd.f32 1.0, %v2794_v5 }
 0x2a8   : > { %2417 = vst.msk [vmem:[%s3456_s27 + $0x30] sm:$0xff] %vm2410_vm4, %v2796_v63  ;;  %2797 = vpow2.f32 %v2298_v6  ;;  %v2192_v10 = vadd.f32 %v3473_v44, %v1938_v1 }
 0x2a9   : > { %2799 = vrcp.f32 %v2353_v7  ;;  %v1600_v12 = vpop.f32.mrf.mxu0 }
 0x2aa   : > { %v2227_v13 = vadd.f32 %v3421_v36, %v2192_v10  ;;  %v1601_v38 = vadd.f32 %v3312_v51, %v1600_v12 }
 0x2ac   : > { %v2259_v11 = vsub.f32 0.0, %v2227_v13  ;;  %v1640_v17 = vmax.f32 %v1601_v38, 0.0 }
 0x2ad   : > { %v1940_v21 = vpop.f32.mrf.mxu1  ;;  %v1807_v22 = vpop.f32.mrf.mxu3 }
 0x2ae   : > { %v2798_v53 = vpop.eup %2797  ;;  %v2300_v25 = vmul.f32 1.442695, %v2259_v11  ;;  %v1662_v16 = vpack.c.bf16 %v1640_v17, %v1639_v8  ;;  %v1941_v44 = vadd.f32 %v1940_v21, %v3511_v28  ;;  %v3557_v40 = vpop.f32.mrf.mxu2 }
 0x2af   : > { %v2800_v27 = vpop.eup %2799  ;;  %v2354_v50 = vadd.f32 1.0, %v2798_v53 }
 0x2b0   : > { %2418 = vst.msk [vmem:[%s3456_s27 + $0x38] sm:$0xff] %vm2410_vm4, %v2800_v27  ;;  %2801 = vpow2.f32 %v2300_v25  ;;  %v2193_v29 = vadd.f32 %v3487_v61, %v1941_v44  ;;  %2712 = vmatmul.msk.bf16.gmra.mxu1 %vm1713_vm3, %v1662_v16 }
 0x2b1   : > { %2803 = vrcp.f32 %v2354_v50  ;;  %v1603_v30 = vpop.f32.mrf.mxu0 }
 0x2b2   : > { %v2228_v31 = vadd.f32 %v3421_v36, %v2193_v29  ;;  %2698 = vmatmul.msk.bf16.gmra.mxu3 %vm1713_vm3, %v1712_v26  ;;  %v1604_v61 = vadd.f32 %v3312_v51, %v1603_v30 }
 0x2b4   : > { %v2260_v32 = vsub.f32 0.0, %v2228_v31  ;;  %v1641_v2 = vmax.f32 %v1604_v61, 0.0 }
 0x2b5   : > { %v1942_v33 = vpop.f32.mrf.mxu1  ;;  %v1810_v28 = vpop.f32.mrf.mxu3 }
 0x2b6   : > { %v2802_v34 = vpop.eup %2801  ;;  %v2302_v39 = vmul.f32 1.442695, %v2260_v32  ;;  %v1943_v19 = vadd.f32 %v1942_v33, %v3524_v49  ;;  %v3569_v60 = vpop.f32.mrf.mxu2 }
 0x2b7   : > { %v2804_v41 = vpop.eup %2803  ;;  %v2355_v35 = vadd.f32 1.0, %v2802_v34 }
 0x2b8   : > { %2419 = vst.msk [vmem:[%s3456_s27 + $0x40] sm:$0xff] %vm2410_vm4, %v2804_v41  ;;  %2805 = vpow2.f32 %v2302_v39  ;;  %v2194_v42 = vadd.f32 %v3500_v18, %v1943_v19 }
 0x2b9   : > { %2807 = vrcp.f32 %v2355_v35  ;;  %v1605_v43 = vpop.f32.mrf.mxu0 }
 0x2ba   : > { %v2229_v45 = vadd.f32 %v3421_v36, %v2194_v42  ;;  %v1606_v46 = vadd.f32 %v3312_v51, %v1605_v43 }
 0x2bc   : > { %v2261_v49 = vsub.f32 0.0, %v2229_v45  ;;  %v1642_v48 = vmax.f32 %v1606_v46, 0.0 }
 0x2bd   : > { %v1945_v52 = vpop.f32.mrf.mxu1  ;;  %v1812_v47 = vpop.f32.mrf.mxu3 }
 0x2be   : > { %v2806_v55 = vpop.eup %2805  ;;  %v2304_v54 = vmul.f32 1.442695, %v2261_v49  ;;  %v1663_v24 = vpack.c.bf16 %v1642_v48, %v1641_v2  ;;  %v1946_v57 = vadd.f32 %v1945_v52, %v1805_v23  ;;  %v2145_v38 = vpop.f32.mrf.mxu2 }
 0x2bf   : > { %v2808_v58 = vpop.eup %2807  ;;  %v2356_v59 = vadd.f32 1.0, %v2806_v55 }
 0x2c0   : > { %2420 = vst.msk [vmem:[%s3456_s27 + $0x48] sm:$0xff] %vm2410_vm4, %v2808_v58  ;;  %2809 = vpow2.f32 %v2304_v54  ;;  %v2195_v18 = vadd.f32 %v3518_v37, %v1946_v57  ;;  %2713 = vmatmul.msk.bf16.gmra.mxu1 %vm1713_vm3, %v1663_v24 }
 0x2c1   : > { %2811 = vrcp.f32 %v2356_v59  ;;  %v1608_v62 = vpop.f32.mrf.mxu0 }
 0x2c2   : > { %v2230_v0 = vadd.f32 %v3421_v36, %v2195_v18  ;;  %v1609_v37 = vadd.f32 %v3312_v51, %v1608_v62 }
 0x2c4   : > { %v2262_v3 = vsub.f32 0.0, %v2230_v0  ;;  %v1643_v14 = vmax.f32 %v1609_v37, 0.0 }
 0x2c5   : > { %v1947_v4 = vpop.f32.mrf.mxu1  ;;  %v1815_v5 = vpop.f32.mrf.mxu3 }
 0x2c6   : > { %v2810_v23 = vpop.eup %2809  ;;  %v2306_v6 = vmul.f32 1.442695, %v2262_v3  ;;  %v1948_v1 = vadd.f32 %v1947_v4, %v1807_v22  ;;  %v2148_v27 = vpop.f32.mrf.mxu2 }
 0x2c7   : > { %v2812_v63 = vpop.eup %2811  ;;  %v2357_v7 = vadd.f32 1.0, %v2810_v23 }
 0x2c8   : > { %2421 = vst.msk [vmem:[%s3456_s27 + $0x50] sm:$0xff] %vm2410_vm4, %v2812_v63  ;;  %2813 = vpow2.f32 %v2306_v6  ;;  %v2196_v9 = vadd.f32 %v3535_v56, %v1948_v1 }
 0x2c9   : > { %2815 = vrcp.f32 %v2357_v7  ;;  %v1610_v10 = vpop.f32.mrf.mxu0 }
 0x2ca   : > { %v2231_v12 = vadd.f32 %v3421_v36, %v2196_v9  ;;  %v1611_v13 = vadd.f32 %v3312_v51, %v1610_v10 }
 0x2cc   : > { %v2263_v15 = vsub.f32 0.0, %v2231_v12  ;;  %v1644_v8 = vmax.f32 %v1611_v13, 0.0 }
 0x2cd   : > { %v1950_v11 = vpop.f32.mrf.mxu1  ;;  %v1817_v17 = vpop.f32.mrf.mxu3 }
 0x2ce   : > { %v2814_v21 = vpop.eup %2813  ;;  %v2308_v22 = vmul.f32 1.442695, %v2263_v15  ;;  %v1664_v53 = vpack.c.bf16 %v1644_v8, %v1643_v14  ;;  %v1951_v25 = vadd.f32 %v1950_v11, %v1810_v28  ;;  %v2150_v46 = vpop.f32.mrf.mxu2 }
 0x2cf   : > { %v2816_v16 = vpop.eup %2815  ;;  %v2358_v44 = vadd.f32 1.0, %v2814_v21 }
 0x2d0   : > { %2422 = vst.msk [vmem:[%s3456_s27 + $0x58] sm:$0xff] %vm2410_vm4, %v2816_v16  ;;  %2817 = vpow2.f32 %v2308_v22  ;;  %v2197_v56 = vadd.f32 %v3547_v20, %v1951_v25  ;;  %2714 = vmatmul.msk.bf16.gmra.mxu1 %vm1713_vm3, %v1664_v53 }
 0x2d1   : > { %2819 = vrcp.f32 %v2358_v44 }
 0x2d2   : > { %v2232_v51 = vadd.f32 %v3421_v36, %v2197_v56 }
 0x2d4   : > { %v2264_v26 = vsub.f32 0.0, %v2232_v51 }
 0x2d5   : > { %v1952_v50 = vpop.f32.mrf.mxu1  ;;  %v1820_v29 = vpop.f32.mrf.mxu3 }
 0x2d6   : > { %v2818_v30 = vpop.eup %2817  ;;  %v2310_v31 = vmul.f32 1.442695, %v2264_v26  ;;  %v1953_v32 = vadd.f32 %v1952_v50, %v1812_v47  ;;  %v2153_v59 = vpop.f32.mrf.mxu2 }
 0x2d7   : > { %v2820_v33 = vpop.eup %2819  ;;  %v2359_v28 = vadd.f32 1.0, %v2818_v30 }
 0x2d8   : > { %2423 = vst.msk [vmem:[%s3456_s27 + $0x60] sm:$0xff] %vm2410_vm4, %v2820_v33  ;;  %2821 = vpow2.f32 %v2310_v31  ;;  %v2198_v20 = vadd.f32 %v3557_v40, %v1953_v32 }
 0x2d9   : > { %2823 = vrcp.f32 %v2359_v28 }
 0x2da   : > { %v2233_v34 = vadd.f32 %v3421_v36, %v2198_v20 }
 0x2dc   : > { %v2265_v39 = vsub.f32 0.0, %v2233_v34 }
 0x2dd   : > { %v1955_v19 = vpop.f32.mrf.mxu1  ;;  %v1822_v41 = vpop.f32.mrf.mxu3 }
 0x2de   : > { %v2822_v35 = vpop.eup %2821  ;;  %v2312_v61 = vmul.f32 1.442695, %v2265_v39  ;;  %v1956_v42 = vadd.f32 %v1955_v19, %v1815_v5  ;;  %v2155_v7 = vpop.f32.mrf.mxu2 }
 0x2df   : > { %v2824_v43 = vpop.eup %2823  ;;  %v2360_v45 = vadd.f32 1.0, %v2822_v35 }
 0x2e0   : > { %2424 = vst.msk [vmem:[%s3456_s27 + $0x68] sm:$0xff] %vm2410_vm4, %v2824_v43  ;;  %2825 = vpow2.f32 %v2312_v61  ;;  %v2199_v2 = vadd.f32 %v3569_v60, %v1956_v42 }
 0x2e1   : > { %2827 = vrcp.f32 %v2360_v45 }
 0x2e2   : > { %v2234_v40 = vadd.f32 %v3421_v36, %v2199_v2 }
 0x2e4   : > { %v2266_v49 = vsub.f32 0.0, %v2234_v40 }
 0x2e5   : > { %v1957_v48 = vpop.f32.mrf.mxu1  ;;  %v1825_v57 = vpop.f32.mrf.mxu3 }
 0x2e6   : > { %v2826_v52 = vpop.eup %2825  ;;  %v2314_v47 = vmul.f32 1.442695, %v2266_v49  ;;  %v1958_v55 = vadd.f32 %v1957_v48, %v1817_v17  ;;  %v2158_v22 = vpop.f32.mrf.mxu2 }
 0x2e7   : > { %v2828_v54 = vpop.eup %2827  ;;  %v2361_v24 = vadd.f32 1.0, %v2826_v52 }
 0x2e8   : > { %2425 = vst.msk [vmem:[%s3456_s27 + $0x70] sm:$0xff] %vm2410_vm4, %v2828_v54  ;;  %2829 = vpow2.f32 %v2314_v47  ;;  %v2200_v58 = vadd.f32 %v2145_v38, %v1958_v55 }
 0x2e9   : > { %2831 = vrcp.f32 %v2361_v24 }
 0x2ea   : > { %v2235_v18 = vadd.f32 %v3421_v36, %v2200_v58 }
 0x2ec   : > { %v2267_v60 = vsub.f32 0.0, %v2235_v18 }
 0x2ed   : > { %v1960_v62 = vpop.f32.mrf.mxu1  ;;  %v1827_v1 = vpop.f32.mrf.mxu3 }
 0x2ee   : > { %v2830_v0 = vpop.eup %2829  ;;  %v2316_v3 = vmul.f32 1.442695, %v2267_v60  ;;  %v1961_v4 = vadd.f32 %v1960_v62, %v1820_v29  ;;  %v2160_v20 = vpop.f32.mrf.mxu2 }
 0x2ef   : > { %v2832_v5 = vpop.eup %2831  ;;  %v2362_v23 = vadd.f32 1.0, %v2830_v0 }
 0x2f0   : > { %2426 = vst.msk [vmem:[%s3456_s27 + $0x78] sm:$0xff] %vm2410_vm4, %v2832_v5  ;;  %2833 = vpow2.f32 %v2316_v3  ;;  %v2201_v6 = vadd.f32 %v2148_v27, %v1961_v4 }
 0x2f1   : > { %2835 = vrcp.f32 %v2362_v23 }
 0x2f2   : > { %v2236_v63 = vadd.f32 %v3421_v36, %v2201_v6 }
 0x2f4   : > { %v2268_v37 = vsub.f32 0.0, %v2236_v63 }
 0x2f5   : > { %v1962_v9 = vpop.f32.mrf.mxu1  ;;  %v1830_v11 = vpop.f32.mrf.mxu3 }
 0x2f6   : > { %v2834_v10 = vpop.eup %2833  ;;  %v2318_v12 = vmul.f32 1.442695, %v2268_v37  ;;  %v1963_v13 = vadd.f32 %v1962_v9, %v1822_v41  ;;  %v2163_v40 = vpop.f32.mrf.mxu2 }
 0x2f7   : > { %v2836_v38 = vpop.eup %2835  ;;  %v2363_v14 = vadd.f32 1.0, %v2834_v10 }
 0x2f8   : > { %2427 = vst.msk [vmem:[%s3456_s27 + $0x80] sm:$0xff] %vm2410_vm4, %v2836_v38  ;;  %2837 = vpow2.f32 %v2318_v12  ;;  %v2202_v15 = vadd.f32 %v2150_v46, %v1963_v13 }
 0x2f9   : > { %2839 = vrcp.f32 %v2363_v14 }
 0x2fa   : > { %v2237_v8 = vadd.f32 %v3421_v36, %v2202_v15 }
 0x2fc   : > { %v2269_v17 = vsub.f32 0.0, %v2237_v8 }
 0x2fd   : > { %v1965_v21 = vpop.f32.mrf.mxu1  ;;  %v1832_v29 = vpop.f32.mrf.mxu3 }
 0x2fe   : > { %v2838_v53 = vpop.eup %2837  ;;  %v2320_v25 = vmul.f32 1.442695, %v2269_v17  ;;  %v1966_v16 = vadd.f32 %v1965_v21, %v1825_v57  ;;  %v2165_v60 = vpop.f32.mrf.mxu2 }
 0x2ff   : > { %v2840_v44 = vpop.eup %2839  ;;  %v2364_v56 = vadd.f32 1.0, %v2838_v53 }
 0x300   : > { %2428 = vst.msk [vmem:[%s3456_s27 + $0x88] sm:$0xff] %vm2410_vm4, %v2840_v44  ;;  %2841 = vpow2.f32 %v2320_v25  ;;  %v2203_v51 = vadd.f32 %v2153_v59, %v1966_v16 }
 0x301   : > { %2843 = vrcp.f32 %v2364_v56 }
 0x302   : > { %v2238_v26 = vadd.f32 %v3421_v36, %v2203_v51 }
 0x304   : > { %v2270_v27 = vsub.f32 0.0, %v2238_v26 }
 0x305   : > { %v1967_v50 = vpop.f32.mrf.mxu1  ;;  %v1835_v46 = vpop.f32.mrf.mxu3 }
 0x306   : > { %v2842_v30 = vpop.eup %2841  ;;  %v2322_v31 = vmul.f32 1.442695, %v2270_v27  ;;  %v1968_v32 = vadd.f32 %v1967_v50, %v1827_v1  ;;  %v2168_v10 = vpop.f32.mrf.mxu2 }
 0x307   : > { %v2844_v33 = vpop.eup %2843  ;;  %v2365_v28 = vadd.f32 1.0, %v2842_v30 }
 0x308   : > { %2429 = vst.msk [vmem:[%s3456_s27 + $0x90] sm:$0xff] %vm2410_vm4, %v2844_v33  ;;  %2845 = vpow2.f32 %v2322_v31  ;;  %v2204_v34 = vadd.f32 %v2155_v7, %v1968_v32 }
 0x309   : > { %2847 = vrcp.f32 %v2365_v28 }
 0x30a   : > { %v2239_v39 = vadd.f32 %v3421_v36, %v2204_v34 }
 0x30c   : > { %v2271_v19 = vsub.f32 0.0, %v2239_v39 }
 0x30d   : > { %v1970_v41 = vpop.f32.mrf.mxu1  ;;  %v1837_v59 = vpop.f32.mrf.mxu3 }
 0x30e   : > { %v2846_v35 = vpop.eup %2845  ;;  %v2324_v61 = vmul.f32 1.442695, %v2271_v19  ;;  %v1971_v42 = vadd.f32 %v1970_v41, %v1830_v11  ;;  %v2170_v51 = vpop.f32.mrf.mxu2 }
 0x30f   : > { %v2848_v43 = vpop.eup %2847  ;;  %v2366_v45 = vadd.f32 1.0, %v2846_v35 }
 0x310   : > { %2430 = vst.msk [vmem:[%s3456_s27 + $0x98] sm:$0xff] %vm2410_vm4, %v2848_v43  ;;  %2849 = vpow2.f32 %v2324_v61  ;;  %v2205_v2 = vadd.f32 %v2158_v22, %v1971_v42 }
 0x311   : > { %2851 = vrcp.f32 %v2366_v45 }
 0x312   : > { %v2240_v49 = vadd.f32 %v3421_v36, %v2205_v2 }
 0x314   : > { %v2272_v48 = vsub.f32 0.0, %v2240_v49 }
 0x315   : > { %v1972_v52 = vpop.f32.mrf.mxu1  ;;  %v1840_v7 = vpop.f32.mrf.mxu3 }
 0x316   : > { %v2850_v47 = vpop.eup %2849  ;;  %v2326_v55 = vmul.f32 1.442695, %v2272_v48  ;;  %v1973_v54 = vadd.f32 %v1972_v52, %v1832_v29  ;;  %v2173_v39 = vpop.f32.mrf.mxu2 }
 0x317   : > { %v2852_v24 = vpop.eup %2851  ;;  %v2367_v57 = vadd.f32 1.0, %v2850_v47 }
 0x318   : > { %2431 = vst.msk [vmem:[%s3456_s27 + $0xa0] sm:$0xff] %vm2410_vm4, %v2852_v24  ;;  %2853 = vpow2.f32 %v2326_v55  ;;  %v2206_v58 = vadd.f32 %v2160_v20, %v1973_v54 }
 0x319   : > { %2855 = vrcp.f32 %v2367_v57 }
 0x31a   : > { %v2241_v18 = vadd.f32 %v3421_v36, %v2206_v58 }
 0x31c   : > { %v2273_v62 = vsub.f32 0.0, %v2241_v18 }
 0x31d   : > { %v1975_v0 = vpop.f32.mrf.mxu1  ;;  %v1842_v21 = vpop.f32.mrf.mxu3 }
 0x31e   : > { %v2854_v3 = vpop.eup %2853  ;;  %v2328_v4 = vmul.f32 1.442695, %v2273_v62  ;;  %v1976_v5 = vadd.f32 %v1975_v0, %v1835_v46  ;;  %v2175_v48 = vpop.f32.mrf.mxu2 }
 0x31f   : > { %v2856_v23 = vpop.eup %2855  ;;  %v2368_v6 = vadd.f32 1.0, %v2854_v3 }
 0x320   : > { %2432 = vst.msk [vmem:[%s3456_s27 + $0xa8] sm:$0xff] %vm2410_vm4, %v2856_v23  ;;  %2857 = vpow2.f32 %v2328_v4  ;;  %v2207_v1 = vadd.f32 %v2163_v40, %v1976_v5 }
 0x321   : > { %2859 = vrcp.f32 %v2368_v6 }
 0x322   : > { %v2242_v63 = vadd.f32 %v3421_v36, %v2207_v1 }
 0x324   : > { %v2274_v37 = vsub.f32 0.0, %v2242_v63 }
 0x325   : > { %v1977_v9 = vpop.f32.mrf.mxu1  ;;  %v1845_v20 = vpop.f32.mrf.mxu3 }
 0x326   : > { %v2858_v12 = vpop.eup %2857  ;;  %v2330_v13 = vmul.f32 1.442695, %v2274_v37  ;;  %v1978_v38 = vadd.f32 %v1977_v9, %v1837_v59  ;;  %v2178_v0 = vpop.f32.mrf.mxu2 }
 0x327   : > { %v2860_v14 = vpop.eup %2859  ;;  %v2369_v15 = vadd.f32 1.0, %v2858_v12 }
 0x328   : > { %2433 = vst.msk [vmem:[%s3456_s27 + $0xb0] sm:$0xff] %vm2410_vm4, %v2860_v14  ;;  %2861 = vpow2.f32 %v2330_v13  ;;  %v2208_v8 = vadd.f32 %v2165_v60, %v1978_v38 }
 0x329   : > { %2863 = vrcp.f32 %v2369_v15 }
 0x32a   : > { %v2243_v11 = vadd.f32 %v3421_v36, %v2208_v8 }
 0x32c   : > { %v2275_v17 = vsub.f32 0.0, %v2243_v11 }
 0x32d   : > { %v1980_v22 = vpop.f32.mrf.mxu1  ;;  %v1847_v40 = vpop.f32.mrf.mxu3 }
 0x32e   : > { %v2862_v53 = vpop.eup %2861  ;;  %v2332_v25 = vmul.f32 1.442695, %v2275_v17  ;;  %v1981_v16 = vadd.f32 %v1980_v22, %v1840_v7  ;;  %v2180_v8 = vpop.f32.mrf.mxu2  ;;  %v2895_v17 = vld [vmem:[#allocation2] ss:$0 sm:$0xff] }
 0x32f   : > { %v2864_v44 = vpop.eup %2863  ;;  %v2370_v56 = vadd.f32 1.0, %v2862_v53 }
 0x330   : > { %2434 = vst.msk [vmem:[%s3456_s27 + $0xb8] sm:$0xff] %vm2410_vm4, %v2864_v44  ;;  %2865 = vpow2.f32 %v2332_v25  ;;  %v2209_v26 = vadd.f32 %v2168_v10, %v1981_v16 }
 0x331   : > { %2867 = vrcp.f32 %v2370_v56 }
 0x332   : > { %v2244_v27 = vadd.f32 %v3421_v36, %v2209_v26 }
 0x334   : > { %v2276_v50 = vsub.f32 0.0, %v2244_v27 }
 0x335   : > { %v1982_v29 = vpop.f32.mrf.mxu1  ;;  %v1850_v60 = vpop.f32.mrf.mxu3 }
 0x336   : > { %v2866_v30 = vpop.eup %2865  ;;  %v2334_v31 = vmul.f32 1.442695, %v2276_v50  ;;  %v1983_v32 = vadd.f32 %v1982_v29, %v1842_v21 }
 0x337   : > { %v2868_v33 = vpop.eup %2867  ;;  %v2371_v28 = vadd.f32 1.0, %v2866_v30 }
 0x338   : > { %2435 = vst.msk [vmem:[%s3456_s27 + $0xc0] sm:$0xff] %vm2410_vm4, %v2868_v33  ;;  %2869 = vpow2.f32 %v2334_v31  ;;  %v2210_v34 = vadd.f32 %v2170_v51, %v1983_v32 }
 0x339   : > { %2871 = vrcp.f32 %v2371_v28 }
 0x33a   : > { %v2245_v19 = vadd.f32 %v3421_v36, %v2210_v34 }
 0x33c   : > { %v2277_v41 = vsub.f32 0.0, %v2245_v19 }
 0x33d   : > { %v1985_v35 = vpop.f32.mrf.mxu1  ;;  %v1852_v9 = vpop.f32.mrf.mxu3 }
 0x33e   : > { %v2870_v61 = vpop.eup %2869  ;;  %v2336_v42 = vmul.f32 1.442695, %v2277_v41  ;;  %v1986_v43 = vadd.f32 %v1985_v35, %v1845_v20 }
 0x33f   : > { %v2872_v45 = vpop.eup %2871  ;;  %v2372_v46 = vadd.f32 1.0, %v2870_v61 }
 0x340   : > { %2436 = vst.msk [vmem:[%s3456_s27 + $0xc8] sm:$0xff] %vm2410_vm4, %v2872_v45  ;;  %2873 = vpow2.f32 %v2336_v42  ;;  %v2211_v2 = vadd.f32 %v2173_v39, %v1986_v43 }
 0x341   : > { %2875 = vrcp.f32 %v2372_v46 }
 0x342   : > { %v2246_v49 = vadd.f32 %v3421_v36, %v2211_v2 }
 0x344   : > { %v2278_v52 = vsub.f32 0.0, %v2246_v49 }
 0x345   : > { %v1987_v47 = vpop.f32.mrf.mxu1 }
 0x346   : > { %v2874_v55 = vpop.eup %2873  ;;  %v2338_v54 = vmul.f32 1.442695, %v2278_v52  ;;  %v1988_v24 = vadd.f32 %v1987_v47, %v1847_v40 }
 0x347   : > { %v2876_v57 = vpop.eup %2875  ;;  %v2373_v58 = vadd.f32 1.0, %v2874_v55 }
 0x348   : > { %2437 = vst.msk [vmem:[%s3456_s27 + $0xd0] sm:$0xff] %vm2410_vm4, %v2876_v57  ;;  %2877 = vpow2.f32 %v2338_v54  ;;  %v2212_v59 = vadd.f32 %v2175_v48, %v1988_v24 }
 0x349   : > { %2879 = vrcp.f32 %v2373_v58 }
 0x34a   : > { %v2247_v18 = vadd.f32 %v3421_v36, %v2212_v59 }
 0x34c   : > { %v2279_v62 = vsub.f32 0.0, %v2247_v18 }
 0x34d   : > { %v1990_v3 = vpop.f32.mrf.mxu1 }
 0x34e   : > { %v2878_v4 = vpop.eup %2877  ;;  %v2340_v5 = vmul.f32 1.442695, %v2279_v62  ;;  %v1991_v23 = vadd.f32 %v1990_v3, %v1850_v60 }
 0x34f   : > { %v2880_v6 = vpop.eup %2879  ;;  %v2374_v1 = vadd.f32 1.0, %v2878_v4 }
 0x350   : > { %2438 = vst.msk [vmem:[%s3456_s27 + $0xd8] sm:$0xff] %vm2410_vm4, %v2880_v6  ;;  %2881 = vpow2.f32 %v2340_v5  ;;  %v2213_v63 = vadd.f32 %v2178_v0, %v1991_v23 }
 0x351   : > { %2883 = vrcp.f32 %v2374_v1 }
 0x352   : > { %v2248_v7 = vadd.f32 %v3421_v36, %v2213_v63 }
 0x354   : > { %v2280_v37 = vsub.f32 0.0, %v2248_v7 }
 0x355   : > { %v1992_v10 = vpop.f32.mrf.mxu1 }
 0x356   : > { %v2882_v12 = vpop.eup %2881  ;;  %v2342_v13 = vmul.f32 1.442695, %v2280_v37  ;;  %v1993_v38 = vadd.f32 %v1992_v10, %v1852_v9 }
 0x357   : > { %v2884_v14 = vpop.eup %2883  ;;  %v2375_v15 = vadd.f32 1.0, %v2882_v12 }
 0x358   : > { %2439 = vst.msk [vmem:[%s3456_s27 + $0xe0] sm:$0xff] %vm2410_vm4, %v2884_v14  ;;  %2885 = vpow2.f32 %v2342_v13  ;;  %v2214_v11 = vadd.f32 %v2180_v8, %v1993_v38 }
 0x359   : > { %2887 = vrcp.f32 %v2375_v15 }
 0x35a   : > { %v2249_v21 = vadd.f32 %v2895_v17, %v2214_v11 }
 0x35c   : > { %v2281_v36 = vsub.f32 0.0, %v2249_v21 }
 0x35e   : > { %v2886_v22 = vpop.eup %2885  ;;  %v2344_v53 = vmul.f32 1.442695, %v2281_v36 }
 0x35f   : > { %v2888_v25 = vpop.eup %2887  ;;  %v2376_v16 = vadd.f32 1.0, %v2886_v22 }
 0x360   : > { %2440 = vst.msk [vmem:[%s3456_s27 + $0xe8] sm:$0xff] %vm2410_vm4, %v2888_v25  ;;  %2889 = vpow2.f32 %v2344_v53 }
 0x361   : > { %2891 = vrcp.f32 %v2376_v16 }
 0x366   : > { %v2890_v44 = vpop.eup %2889 }
 0x367   : > { %v2892_v56 = vpop.eup %2891  ;;  %v2377_v51 = vadd.f32 1.0, %v2890_v44 }
 0x368   : > { %2441 = vst.msk [vmem:[%s3456_s27 + $0xf0] sm:$0xff] %vm2410_vm4, %v2892_v56 }
 0x369   : > { %2893 = vrcp.f32 %v2377_v51 }
 0x36f   : > { %v2894_v26 = vpop.eup %2893 }
 0x370   : > { %2442 = vst.msk [vmem:[%s3456_s27 + $0xf8] sm:$0xff] %vm2410_vm4, %v2894_v26 }
 0x371 PF: > { %s27_s20 = sadd.s32 1, %s2902_s20  }
 0x372   : > { %p24_p4 = scmp.ge.s32.totalorder %s27_s20, 4  }
 0x374   :  { %26 = sbr.rel (!%p24_p4) target bundleno = 3 (0x3), region = 119 }

</bundles_post_ra>
